<compile_context>
chip_gen: v7x
topology: tpu7x:2x2x1
jax: 0.10.0
libtpu: 0.0.40
codegen_flags: <defaults>
</compile_context>

<pallas_src>
import functools

import jax
import jax.numpy as jnp
from jax import lax
from jax.experimental import pallas as pl
from jax.experimental.pallas import tpu as pltpu

EPS = 1e-5  # PyTorch BatchNorm default eps


def _fold_bn(gamma, beta, mean, var):
    """Fold eval-mode BatchNorm into a per-channel scale/shift pair."""
    scale = gamma * lax.rsqrt(var + EPS)
    shift = beta - mean * scale
    return scale, shift


def _pick_batch_block(n, per_image_bytes, budget=4 << 20):
    """Largest batch block NB that divides N, keeps >= 2 grid steps (pipeline
    depth + v7x dual-core sharding) and stays under a per-step VMEM budget."""
    best = 1
    for nb in range(1, n + 1):
        if n % nb:
            continue
        if n // nb < 2 and n >= 2:
            break
        if nb * per_image_bytes > budget:
            break
        best = nb
    return best


# ----------------------------------------------------------------------------
# Fused kernel: NB images per grid step, channel-major (C, H*W) layout.
#   BN1 -> spike -> 1x1 conv -> LIF#1 -> BN2 -> spike -> 3x3 conv -> LIF#2
#   -> out = concat([mem_thr2, x], channel axis)
# ----------------------------------------------------------------------------
def _bottleneck_kernel(x_ref, mem0_ref, mem1_ref, w1_ref, w2_ref,
                       sc1_ref, sh1_ref, sc2_ref, sh2_ref, bmask_ref, scal_ref,
                       out_ref, new_mem0_ref, new_mem1_ref, *, W):
    NB, Cin, HW = x_ref.shape
    g = new_mem1_ref.shape[1]
    f32 = jnp.float32

    thr1 = scal_ref[0]
    inv_thr1 = scal_ref[1]
    leak1 = scal_ref[2]
    thr2 = scal_ref[3]
    inv_thr2 = scal_ref[4]
    leak2 = scal_ref[5]

    # Constant operands: load once, reuse across the NB images of this block.
    w1 = w1_ref[...]                       # (C1, Cin)  bf16
    w2 = w2_ref[...]                       # (9g, C1)   bf16
    sc1 = sc1_ref[...]                     # (Cin, 1)   f32
    sh1 = sh1_ref[...]
    sc2 = sc2_ref[...]                     # (C1, 1)    f32
    sh2 = sh2_ref[...]
    h_lo = bmask_ref[0:1, :]               # row - 1 in range
    h_hi = bmask_ref[1:2, :]               # row + 1 in range
    w_lo = bmask_ref[2:3, :]               # col - 1 in range
    w_hi = bmask_ref[3:4, :]               # col + 1 in range

    for b in range(NB):                    # static unroll over the batch block
        # ---- BN1 (folded) -> spike -> 1x1 conv (bf16 MXU, f32 accumulate) --
        x_nat = x_ref[b, :, :]                                   # (Cin, HW)
        x = x_nat.astype(f32)
        spike1 = ((x * sc1 + sh1) > 0.0).astype(w1.dtype)        # exact 0/1
        conv1 = jnp.dot(w1, spike1, preferred_element_type=f32)  # (C1, HW)

        # ---- LIF membrane update #1 (uses OLD membrane, as in PyTorch) -----
        mem0 = mem0_ref[b, :, :].astype(f32)                     # (C1, HW)
        mem_thr1 = mem0 * inv_thr1 - 1.0
        rst1 = thr1 * (mem_thr1 > 0.0).astype(f32)
        new_mem0_ref[b, :, :] = (leak1 * mem0 + conv1 - rst1
                                 ).astype(new_mem0_ref.dtype)

        # ---- BN2 -> spike (VMEM-resident, never written to HBM) ------------
        spike2 = ((mem_thr1 * sc2 + sh2) > 0.0).astype(w2.dtype)

        # ---- 3x3 conv (padding=1): stacked matmul + per-tap roll/mask ------
        # y_all[tap*g + o, i] = sum_c w2[o, c, kh, kw] * spike2[c, i]
        y_all = jnp.dot(w2, spike2, preferred_element_type=f32)  # (9g, HW)

        conv2 = jnp.zeros((g, HW), f32)
        for kh in range(3):
            for kw in range(3):
                dh, dw = kh - 1, kw - 1
                tap = kh * 3 + kw
                y = y_all[tap * g:(tap + 1) * g, :]              # (g, HW) view
                off = dh * W + dw                                # flat offset
                if off != 0:
                    # align: y_aligned[:, i] = y[:, i + off]   (roll by -off)
                    y = pltpu.roll(y, (-off) % HW, axis=1)
                mask = None
                if dh == -1:
                    mask = h_lo
                elif dh == 1:
                    mask = h_hi
                if dw == -1:
                    mask = w_lo if mask is None else mask * w_lo
                elif dw == 1:
                    mask = w_hi if mask is None else mask * w_hi
                conv2 = conv2 + (y if mask is None else mask * y)

        # ---- LIF membrane update #2 + concatenated output ------------------
        mem1 = mem1_ref[b, :, :].astype(f32)                     # (g, HW)
        mem_thr2 = mem1 * inv_thr2 - 1.0
        rst2 = thr2 * (mem_thr2 > 0.0).astype(f32)
        new_mem1_ref[b, :, :] = (leak2 * mem1 + conv2 - rst2
                                 ).astype(new_mem1_ref.dtype)

        # out = torch.cat([mem_thr, inp], dim=1): two lane-dense sub-stores
        # directly in flat-NCHW layout (no XLA concat / transpose pass).
        out_ref[b, 0:g, :] = mem_thr2.astype(out_ref.dtype)
        out_ref[b, g:g + Cin, :] = x_nat.astype(out_ref.dtype)


# ----------------------------------------------------------------------------
# Wrapper: NCHW in / NCHW out, only free reshapes at the boundary.
# Returns (out, new_mem[pos], new_mem[pos+1]); the membranes are donated and
# aliased so the update is in place.
# ----------------------------------------------------------------------------
@functools.partial(jax.jit, donate_argnums=(1, 2))
def bottleneck_forward(x_nchw, mem0_nchw, mem1_nchw, p):
    N, Cin, H, W = x_nchw.shape
    C1 = mem0_nchw.shape[1]
    g = mem1_nchw.shape[1]
    HW = H * W
    f32 = jnp.float32
    bf16 = jnp.bfloat16

    # Batch block size: amortize per-grid-step overhead while keeping >= 2
    # grid steps (pipeline + v7x dual-TC) and bounded per-step VMEM.
    per_image_bytes = HW * (
        (Cin + g + Cin) * x_nchw.dtype.itemsize        # x in + concat-out share
        + 2 * C1 * mem0_nchw.dtype.itemsize            # mem0 in/out
        + 2 * g * mem1_nchw.dtype.itemsize)            # mem1 in/out
    NB = _pick_batch_block(N, per_image_bytes)
    grid = (N // NB,)

    # VMEM cap: double-buffered blocks + constants, clamped to [16, 32] MiB
    # (headroom on v7x's 64 MiB physical VMEM).
    const_bytes = (C1 * Cin + 9 * g * C1) * 2 + (2 * Cin + 2 * C1 + 4 * HW) * 4
    est = 2 * NB * per_image_bytes + 2 * const_bytes
    vmem_limit = int(min(max(4 * est, 16 << 20), 32 << 20))

    # Free reshapes (no transposes, no dtype round trips): (N, C, H*W).
    x = x_nchw.reshape(N, Cin, HW)
    mem0 = mem0_nchw.reshape(N, C1, HW)
    mem1 = mem1_nchw.reshape(N, g, HW)

    # Fold each BN into one scale/shift pair (halves the tiny operands).
    sc1, sh1 = _fold_bn(p["bn1_gamma"], p["bn1_beta"], p["bn1_mean"], p["bn1_var"])
    sc2, sh2 = _fold_bn(p["bn2_gamma"], p["bn2_beta"], p["bn2_mean"], p["bn2_var"])
    sc1 = sc1.reshape(Cin, 1).astype(f32)
    sh1 = sh1.reshape(Cin, 1).astype(f32)
    sc2 = sc2.reshape(C1, 1).astype(f32)
    sh2 = sh2.reshape(C1, 1).astype(f32)

    # Conv weights in matmul layout, bf16 for the MXU (spikes are exact 0/1).
    w1_mat = p["w1"].reshape(C1, Cin).astype(bf16)                # (C1, Cin)
    # (g, C1, 3, 3) -> (kh, kw, o, i) -> (9*g, C1), tap = kh*3 + kw
    w2_mat = jnp.transpose(p["w2"], (2, 3, 0, 1)).reshape(9 * g, C1).astype(bf16)

    # Boundary-validity masks for the 3x3 taps over the flat pixel axis.
    col = jnp.arange(HW, dtype=jnp.int32) % W
    row = jnp.arange(HW, dtype=jnp.int32) // W
    bmask = jnp.stack([(row >= 1), (row <= H - 2),
                       (col >= 1), (col <= W - 2)]).astype(f32)   # (4, HW)

    # Scalars: threshold, 1/threshold, leak for both LIF updates (SMEM).
    thr1 = jnp.asarray(p["thr1"], f32)
    leak1 = jnp.asarray(p["leak1"], f32)
    thr2 = jnp.asarray(p["thr2"], f32)
    leak2 = jnp.asarray(p["leak2"], f32)
    scal = jnp.stack([thr1, 1.0 / thr1, leak1, thr2, 1.0 / thr2, leak2])

    kernel = functools.partial(_bottleneck_kernel, W=W)

    img_spec = lambda c: pl.BlockSpec((NB, c, HW), lambda n: (n, 0, 0))
    const_spec = lambda r, c: pl.BlockSpec((r, c), lambda n: (0, 0))
    smem_spec = pl.BlockSpec(memory_space=pltpu.MemorySpace.SMEM)

    out_cat, new_mem0, new_mem1 = pl.pallas_call(
        kernel,
        out_shape=(jax.ShapeDtypeStruct((N, g + Cin, HW), x_nchw.dtype),
                   jax.ShapeDtypeStruct((N, C1, HW), mem0_nchw.dtype),
                   jax.ShapeDtypeStruct((N, g, HW), mem1_nchw.dtype)),
        grid=grid,
        in_specs=[
            img_spec(Cin),                 # x
            img_spec(C1),                  # mem[pos]
            img_spec(g),                   # mem[pos+1]
            const_spec(C1, Cin),           # 1x1 conv weight (bf16)
            const_spec(9 * g, C1),         # stacked 3x3 conv weight (bf16)
            const_spec(Cin, 1),            # BN1 scale
            const_spec(Cin, 1),            # BN1 shift
            const_spec(C1, 1),             # BN2 scale
            const_spec(C1, 1),             # BN2 shift
            const_spec(4, HW),             # boundary masks
            smem_spec,                     # [thr1, 1/thr1, leak1, thr2, 1/thr2, leak2]
        ],
        out_specs=(img_spec(g + Cin), img_spec(C1), img_spec(g)),
        # Update the membranes in place (mem0 -> new_mem0, mem1 -> new_mem1);
        # pairs with donate_argnums on the jit so no defensive HBM copies.
        input_output_aliases={1: 1, 2: 2},
        compiler_params=pltpu.CompilerParams(
            dimension_semantics=("parallel",),
            vmem_limit_bytes=vmem_limit),
    )(x, mem0, mem1, w1_mat, w2_mat, sc1, sh1, sc2, sh2, bmask, scal)

    # Free row-major views back to NCHW.
    return (out_cat.reshape(N, g + Cin, H, W),
            new_mem0.reshape(N, C1, H, W),
            new_mem1.reshape(N, g, H, W))


# ----------------------------------------------------------------------------
# Pure-JAX reference (NCHW, lax.conv).  Weights are rounded through bf16 so
# the comparison isolates kernel structure (rolls/masks/LIF), not dtype policy.
# ----------------------------------------------------------------------------
def reference_forward(x, mem0, mem1, p):
    f32 = jnp.float32
    x = x.astype(f32)
    mem0 = mem0.astype(f32)
    mem1 = mem1.astype(f32)
    w1 = p["w1"].astype(jnp.bfloat16).astype(f32)
    w2 = p["w2"].astype(jnp.bfloat16).astype(f32)

    sc1, sh1 = _fold_bn(p["bn1_gamma"], p["bn1_beta"], p["bn1_mean"], p["bn1_var"])
    sc2, sh2 = _fold_bn(p["bn2_gamma"], p["bn2_beta"], p["bn2_mean"], p["bn2_var"])
    cvec = lambda v: v.reshape(1, -1, 1, 1)

    s1 = ((x * cvec(sc1) + cvec(sh1)) > 0.0).astype(f32)
    conv1 = lax.conv_general_dilated(
        s1, w1, (1, 1), "VALID", dimension_numbers=("NCHW", "OIHW", "NCHW"))

    thr1, leak1 = p["thr1"], p["leak1"]
    mem_thr1 = mem0 / thr1 - 1.0
    rst1 = thr1 * (mem_thr1 > 0.0).astype(f32)
    new_mem0 = leak1 * mem0 + conv1 - rst1

    s2 = ((mem_thr1 * cvec(sc2) + cvec(sh2)) > 0.0).astype(f32)
    conv2 = lax.conv_general_dilated(
        s2, w2, (1, 1), ((1, 1), (1, 1)),
        dimension_numbers=("NCHW", "OIHW", "NCHW"))

    thr2, leak2 = p["thr2"], p["leak2"]
    mem_thr2 = mem1 / thr2 - 1.0
    rst2 = thr2 * (mem_thr2 > 0.0).astype(f32)
    new_mem1 = leak2 * mem1 + conv2 - rst2

    out = jnp.concatenate([mem_thr2, x], axis=1)
    return out, new_mem0, new_mem1


if __name__ == "__main__":
    # Small shapes consistent with the module: Conv2d(in_planes -> 4*growth, 1x1)
    # then Conv2d(4*growth -> growth, 3x3, padding=1).  N=4 exercises the
    # batch-blocked grid (NB=2 -> 2 grid steps, even for v7x dual-core).
    N, H, W = 4, 16, 16
    in_planes, growth_rate = 8, 8
    C1 = 4 * growth_rate          # 32
    g = growth_rate               # 8

    key = jax.random.PRNGKey(0)
    ks = jax.random.split(key, 9)

    x_nchw = jax.random.normal(ks[0], (N, in_planes, H, W), jnp.float32)
    mem0_nchw = jax.random.normal(ks[1], (N, C1, H, W), jnp.float32)   # mem[pos]
    mem1_nchw = jax.random.normal(ks[2], (N, g, H, W), jnp.float32)    # mem[pos+1]

    params = dict(
        # PyTorch weight layouts: (O, I, kH, kW)
        w1=jax.random.normal(ks[3], (C1, in_planes, 1, 1), jnp.float32)
           * (in_planes ** -0.5),
        w2=jax.random.normal(ks[4], (g, C1, 3, 3), jnp.float32)
           * ((9 * C1) ** -0.5),
        # SeparatedBatchNorm1d init: weight=0.1, bias=0; synthetic running stats
        bn1_gamma=jnp.full((in_planes,), 0.1, jnp.float32),
        bn1_beta=jnp.zeros((in_planes,), jnp.float32),
        bn1_mean=jax.random.normal(ks[5], (in_planes,), jnp.float32) * 0.1,
        bn1_var=jax.random.uniform(ks[6], (in_planes,), jnp.float32,
                                   minval=0.5, maxval=1.5),
        bn2_gamma=jnp.full((C1,), 0.1, jnp.float32),
        bn2_beta=jnp.zeros((C1,), jnp.float32),
        bn2_mean=jax.random.normal(ks[7], (C1,), jnp.float32) * 0.1,
        bn2_var=jax.random.uniform(ks[8], (C1,), jnp.float32,
                                   minval=0.5, maxval=1.5),
        # threshold / leak scalars for (t, pos) and (t, pos+1)
        thr1=1.0, leak1=0.9,
        thr2=0.5, leak2=0.85,
    )

    # Reference first: mem0/mem1 are donated to the kernel call below.
    r_out, r_mem0, r_mem1 = reference_forward(x_nchw, mem0_nchw, mem1_nchw, params)

    out, new_mem0, new_mem1 = jax.block_until_ready(
        bottleneck_forward(x_nchw, mem0_nchw, mem1_nchw, params))

    assert out.shape == (N, g + in_planes, H, W)
    assert jnp.allclose(out, r_out, atol=1e-4, rtol=1e-4), \
        float(jnp.max(jnp.abs(out - r_out)))
    assert jnp.allclose(new_mem0, r_mem0, atol=1e-4, rtol=1e-4), \
        float(jnp.max(jnp.abs(new_mem0 - r_mem0)))
    assert jnp.allclose(new_mem1, r_mem1, atol=1e-4, rtol=1e-4), \
        float(jnp.max(jnp.abs(new_mem1 - r_mem1)))

    print("KERNEL_OK")
</pallas_src>

<mosaic_0001>
module attributes {stable_mosaic.version = 11 : i64} {
  func.func @_bottleneck_kernel(%arg0: i32, %arg1: memref<2x8x256xf32, #tpu.memory_space<vmem>>, %arg2: memref<2x32x256xf32, #tpu.memory_space<vmem>>, %arg3: memref<2x8x256xf32, #tpu.memory_space<vmem>>, %arg4: memref<32x8xbf16, #tpu.memory_space<vmem>>, %arg5: memref<72x32xbf16, #tpu.memory_space<vmem>>, %arg6: memref<8x1xf32, #tpu.memory_space<vmem>>, %arg7: memref<8x1xf32, #tpu.memory_space<vmem>>, %arg8: memref<32x1xf32, #tpu.memory_space<vmem>>, %arg9: memref<32x1xf32, #tpu.memory_space<vmem>>, %arg10: memref<4x256xf32, #tpu.memory_space<vmem>>, %arg11: memref<6xf32, #tpu.memory_space<smem>>, %arg12: memref<2x16x256xf32, #tpu.memory_space<vmem>>, %arg13: memref<2x32x256xf32, #tpu.memory_space<vmem>>, %arg14: memref<2x8x256xf32, #tpu.memory_space<vmem>>) attributes {dimension_semantics = [#tpu.dimension_semantics<parallel>], iteration_bounds = array<i64: 2>, scalar_prefetch = 0 : i64, scratch_operands = 0 : i64, tpu.core_type = #tpu.core_type<tc>, window_params = [{transform_indices = @transform_0, window_bounds = array<i64: 2, 8, 256>}, {transform_indices = @transform_1, window_bounds = array<i64: 2, 32, 256>}, {transform_indices = @transform_2, window_bounds = array<i64: 2, 8, 256>}, {pipeline_mode = #tpu.pipeline_mode<synchronous>, transform_indices = @transform_3, window_bounds = array<i64: 32, 8>}, {pipeline_mode = #tpu.pipeline_mode<synchronous>, transform_indices = @transform_4, window_bounds = array<i64: 72, 32>}, {pipeline_mode = #tpu.pipeline_mode<synchronous>, transform_indices = @transform_5, window_bounds = array<i64: 8, 1>}, {pipeline_mode = #tpu.pipeline_mode<synchronous>, transform_indices = @transform_6, window_bounds = array<i64: 8, 1>}, {pipeline_mode = #tpu.pipeline_mode<synchronous>, transform_indices = @transform_7, window_bounds = array<i64: 32, 1>}, {pipeline_mode = #tpu.pipeline_mode<synchronous>, transform_indices = @transform_8, window_bounds = array<i64: 32, 1>}, {pipeline_mode = #tpu.pipeline_mode<synchronous>, transform_indices = @transform_9, window_bounds = array<i64: 4, 256>}, {transform_indices = @transform_10, window_bounds = array<i64: 6>}, {transform_indices = @transform_11, window_bounds = array<i64: 2, 16, 256>}, {transform_indices = @transform_12, window_bounds = array<i64: 2, 32, 256>}, {transform_indices = @transform_13, window_bounds = array<i64: 2, 8, 256>}]} {
    %c0 = arith.constant 0 : index
    %0 = memref.load %arg11[%c0] : memref<6xf32, #tpu.memory_space<smem>>
    %c1 = arith.constant 1 : index
    %1 = memref.load %arg11[%c1] : memref<6xf32, #tpu.memory_space<smem>>
    %c2 = arith.constant 2 : index
    %2 = memref.load %arg11[%c2] : memref<6xf32, #tpu.memory_space<smem>>
    %c3 = arith.constant 3 : index
    %3 = memref.load %arg11[%c3] : memref<6xf32, #tpu.memory_space<smem>>
    %c4 = arith.constant 4 : index
    %4 = memref.load %arg11[%c4] : memref<6xf32, #tpu.memory_space<smem>>
    %c5 = arith.constant 5 : index
    %5 = memref.load %arg11[%c5] : memref<6xf32, #tpu.memory_space<smem>>
    %c0_0 = arith.constant 0 : index
    %c0_1 = arith.constant 0 : index
    %6 = vector.load %arg4[%c0_0, %c0_1] : memref<32x8xbf16, #tpu.memory_space<vmem>>, vector<32x8xbf16>
    %c0_2 = arith.constant 0 : index
    %c0_3 = arith.constant 0 : index
    %7 = vector.load %arg5[%c0_2, %c0_3] : memref<72x32xbf16, #tpu.memory_space<vmem>>, vector<72x32xbf16>
    %c0_4 = arith.constant 0 : index
    %c0_5 = arith.constant 0 : index
    %8 = vector.load %arg6[%c0_4, %c0_5] : memref<8x1xf32, #tpu.memory_space<vmem>>, vector<8x1xf32>
    %c0_6 = arith.constant 0 : index
    %c0_7 = arith.constant 0 : index
    %9 = vector.load %arg7[%c0_6, %c0_7] : memref<8x1xf32, #tpu.memory_space<vmem>>, vector<8x1xf32>
    %c0_8 = arith.constant 0 : index
    %c0_9 = arith.constant 0 : index
    %10 = vector.load %arg8[%c0_8, %c0_9] : memref<32x1xf32, #tpu.memory_space<vmem>>, vector<32x1xf32>
    %c0_10 = arith.constant 0 : index
    %c0_11 = arith.constant 0 : index
    %11 = vector.load %arg9[%c0_10, %c0_11] : memref<32x1xf32, #tpu.memory_space<vmem>>, vector<32x1xf32>
    %c0_12 = arith.constant 0 : index
    %c0_13 = arith.constant 0 : index
    %12 = vector.load %arg10[%c0_12, %c0_13] : memref<4x256xf32, #tpu.memory_space<vmem>>, vector<1x256xf32>
    %c1_14 = arith.constant 1 : index
    %c0_15 = arith.constant 0 : index
    %13 = vector.load %arg10[%c1_14, %c0_15] : memref<4x256xf32, #tpu.memory_space<vmem>>, vector<1x256xf32>
    %c2_16 = arith.constant 2 : index
    %c0_17 = arith.constant 0 : index
    %14 = vector.load %arg10[%c2_16, %c0_17] : memref<4x256xf32, #tpu.memory_space<vmem>>, vector<1x256xf32>
    %c3_18 = arith.constant 3 : index
    %c0_19 = arith.constant 0 : index
    %15 = vector.load %arg10[%c3_18, %c0_19] : memref<4x256xf32, #tpu.memory_space<vmem>>, vector<1x256xf32>
    %c0_20 = arith.constant 0 : index
    %c0_21 = arith.constant 0 : index
    %c0_22 = arith.constant 0 : index
    %16 = vector.load %arg1[%c0_20, %c0_21, %c0_22] : memref<2x8x256xf32, #tpu.memory_space<vmem>>, vector<1x8x256xf32>
    %17 = vector.shape_cast %16 : vector<1x8x256xf32> to vector<8x256xf32>
    %18 = vector.broadcast %8 : vector<8x1xf32> to vector<8x256xf32>
    %19 = arith.mulf %17, %18 : vector<8x256xf32>
    %20 = vector.broadcast %9 : vector<8x1xf32> to vector<8x256xf32>
    %21 = arith.addf %19, %20 : vector<8x256xf32>
    %cst = arith.constant 0.000000e+00 : f32
    %22 = vector.broadcast %cst : f32 to vector<8x256xf32>
    %23 = arith.cmpf ogt, %21, %22 : vector<8x256xf32>
    %24 = arith.extui %23 : vector<8x256xi1> to vector<8x256xi32>
    %25 = arith.sitofp %24 : vector<8x256xi32> to vector<8x256xf32>
    %26 = arith.truncf %25 : vector<8x256xf32> to vector<8x256xbf16>
    %cst_23 = arith.constant dense<0.000000e+00> : vector<32x256xf32>
    %27 = tpu.matmul %6, %26, %cst_23 {dimension_numbers = #tpu.dot_dimension_numbers<[1], [0], [0], [1], [0, 0, 1, 1], [], []>} : vector<32x8xbf16>, vector<8x256xbf16>, vector<32x256xf32> -> vector<32x256xf32>
    %c0_24 = arith.constant 0 : index
    %c0_25 = arith.constant 0 : index
    %c0_26 = arith.constant 0 : index
    %28 = vector.load %arg2[%c0_24, %c0_25, %c0_26] : memref<2x32x256xf32, #tpu.memory_space<vmem>>, vector<1x32x256xf32>
    %29 = vector.shape_cast %28 : vector<1x32x256xf32> to vector<32x256xf32>
    %30 = vector.broadcast %1 : f32 to vector<32x256xf32>
    %31 = arith.mulf %29, %30 : vector<32x256xf32>
    %cst_27 = arith.constant 1.000000e+00 : f32
    %32 = vector.broadcast %cst_27 : f32 to vector<32x256xf32>
    %33 = arith.subf %31, %32 : vector<32x256xf32>
    %cst_28 = arith.constant 0.000000e+00 : f32
    %34 = vector.broadcast %cst_28 : f32 to vector<32x256xf32>
    %35 = arith.cmpf ogt, %33, %34 : vector<32x256xf32>
    %36 = arith.extui %35 : vector<32x256xi1> to vector<32x256xi32>
    %37 = arith.sitofp %36 : vector<32x256xi32> to vector<32x256xf32>
    %38 = vector.broadcast %0 : f32 to vector<32x256xf32>
    %39 = arith.mulf %38, %37 : vector<32x256xf32>
    %40 = vector.broadcast %2 : f32 to vector<32x256xf32>
    %41 = arith.mulf %40, %29 : vector<32x256xf32>
    %42 = arith.addf %41, %27 : vector<32x256xf32>
    %43 = arith.subf %42, %39 : vector<32x256xf32>
    %c0_29 = arith.constant 0 : index
    %c0_30 = arith.constant 0 : index
    %c0_31 = arith.constant 0 : index
    %44 = vector.load %arg13[%c0_29, %c0_30, %c0_31] : memref<2x32x256xf32, #tpu.memory_space<vmem>>, vector<1x32x256xf32>
    %45 = vector.shape_cast %44 : vector<1x32x256xf32> to vector<32x256xf32>
    %46 = vector.shape_cast %43 : vector<32x256xf32> to vector<1x32x256xf32>
    tpu.vector_store %arg13[%c0_29, %c0_30, %c0_31], %46 {strides = array<i32>} : memref<2x32x256xf32, #tpu.memory_space<vmem>>, vector<1x32x256xf32>,
    %47 = vector.broadcast %10 : vector<32x1xf32> to vector<32x256xf32>
    %48 = arith.mulf %33, %47 : vector<32x256xf32>
    %49 = vector.broadcast %11 : vector<32x1xf32> to vector<32x256xf32>
    %50 = arith.addf %48, %49 : vector<32x256xf32>
    %cst_32 = arith.constant 0.000000e+00 : f32
    %51 = vector.broadcast %cst_32 : f32 to vector<32x256xf32>
    %52 = arith.cmpf ogt, %50, %51 : vector<32x256xf32>
    %53 = arith.extui %52 : vector<32x256xi1> to vector<32x256xi32>
    %54 = arith.sitofp %53 : vector<32x256xi32> to vector<32x256xf32>
    %55 = arith.truncf %54 : vector<32x256xf32> to vector<32x256xbf16>
    %cst_33 = arith.constant dense<0.000000e+00> : vector<72x256xf32>
    %56 = tpu.matmul %7, %55, %cst_33 {dimension_numbers = #tpu.dot_dimension_numbers<[1], [0], [0], [1], [0, 0, 1, 1], [], []>} : vector<72x32xbf16>, vector<32x256xbf16>, vector<72x256xf32> -> vector<72x256xf32>
    %cst_34 = arith.constant 0.000000e+00 : f32
    %57 = vector.broadcast %cst_34 : f32 to vector<8x256xf32>
    %58 = vector.extract_strided_slice %56 {offsets = [0, 0], sizes = [8, 256], strides = [1, 1]} : vector<72x256xf32> to vector<8x256xf32>
    %c17_i32 = arith.constant 17 : i32
    %59 = tpu.dynamic_rotate %58 by %c17_i32 dim 1 : vector<8x256xf32>, i32 -> vector<8x256xf32>
    %60 = arith.mulf %12, %14 : vector<1x256xf32>
    %61 = vector.broadcast %60 : vector<1x256xf32> to vector<8x256xf32>
    %62 = arith.mulf %61, %59 : vector<8x256xf32>
    %63 = arith.addf %57, %62 : vector<8x256xf32>
    %64 = vector.extract_strided_slice %56 {offsets = [8, 0], sizes = [8, 256], strides = [1, 1]} : vector<72x256xf32> to vector<8x256xf32>
    %c16_i32 = arith.constant 16 : i32
    %65 = tpu.dynamic_rotate %64 by %c16_i32 dim 1 : vector<8x256xf32>, i32 -> vector<8x256xf32>
    %66 = vector.broadcast %12 : vector<1x256xf32> to vector<8x256xf32>
    %67 = arith.mulf %66, %65 : vector<8x256xf32>
    %68 = arith.addf %63, %67 : vector<8x256xf32>
    %69 = vector.extract_strided_slice %56 {offsets = [16, 0], sizes = [8, 256], strides = [1, 1]} : vector<72x256xf32> to vector<8x256xf32>
    %c15_i32 = arith.constant 15 : i32
    %70 = tpu.dynamic_rotate %69 by %c15_i32 dim 1 : vector<8x256xf32>, i32 -> vector<8x256xf32>
    %71 = arith.mulf %12, %15 : vector<1x256xf32>
    %72 = vector.broadcast %71 : vector<1x256xf32> to vector<8x256xf32>
    %73 = arith.mulf %72, %70 : vector<8x256xf32>
    %74 = arith.addf %68, %73 : vector<8x256xf32>
    %75 = vector.extract_strided_slice %56 {offsets = [24, 0], sizes = [8, 256], strides = [1, 1]} : vector<72x256xf32> to vector<8x256xf32>
    %c1_i32 = arith.constant 1 : i32
    %76 = tpu.dynamic_rotate %75 by %c1_i32 dim 1 : vector<8x256xf32>, i32 -> vector<8x256xf32>
    %77 = vector.broadcast %14 : vector<1x256xf32> to vector<8x256xf32>
    %78 = arith.mulf %77, %76 : vector<8x256xf32>
    %79 = arith.addf %74, %78 : vector<8x256xf32>
    %80 = vector.extract_strided_slice %56 {offsets = [32, 0], sizes = [8, 256], strides = [1, 1]} : vector<72x256xf32> to vector<8x256xf32>
    %81 = arith.addf %79, %80 : vector<8x256xf32>
    %82 = vector.extract_strided_slice %56 {offsets = [40, 0], sizes = [8, 256], strides = [1, 1]} : vector<72x256xf32> to vector<8x256xf32>
    %c255_i32 = arith.constant 255 : i32
    %83 = tpu.dynamic_rotate %82 by %c255_i32 dim 1 : vector<8x256xf32>, i32 -> vector<8x256xf32>
    %84 = vector.broadcast %15 : vector<1x256xf32> to vector<8x256xf32>
    %85 = arith.mulf %84, %83 : vector<8x256xf32>
    %86 = arith.addf %81, %85 : vector<8x256xf32>
    %87 = vector.extract_strided_slice %56 {offsets = [48, 0], sizes = [8, 256], strides = [1, 1]} : vector<72x256xf32> to vector<8x256xf32>
    %c241_i32 = arith.constant 241 : i32
    %88 = tpu.dynamic_rotate %87 by %c241_i32 dim 1 : vector<8x256xf32>, i32 -> vector<8x256xf32>
    %89 = arith.mulf %13, %14 : vector<1x256xf32>
    %90 = vector.broadcast %89 : vector<1x256xf32> to vector<8x256xf32>
    %91 = arith.mulf %90, %88 : vector<8x256xf32>
    %92 = arith.addf %86, %91 : vector<8x256xf32>
    %93 = vector.extract_strided_slice %56 {offsets = [56, 0], sizes = [8, 256], strides = [1, 1]} : vector<72x256xf32> to vector<8x256xf32>
    %c240_i32 = arith.constant 240 : i32
    %94 = tpu.dynamic_rotate %93 by %c240_i32 dim 1 : vector<8x256xf32>, i32 -> vector<8x256xf32>
    %95 = vector.broadcast %13 : vector<1x256xf32> to vector<8x256xf32>
    %96 = arith.mulf %95, %94 : vector<8x256xf32>
    %97 = arith.addf %92, %96 : vector<8x256xf32>
    %98 = vector.extract_strided_slice %56 {offsets = [64, 0], sizes = [8, 256], strides = [1, 1]} : vector<72x256xf32> to vector<8x256xf32>
    %c239_i32 = arith.constant 239 : i32
    %99 = tpu.dynamic_rotate %98 by %c239_i32 dim 1 : vector<8x256xf32>, i32 -> vector<8x256xf32>
    %100 = arith.mulf %13, %15 : vector<1x256xf32>
    %101 = vector.broadcast %100 : vector<1x256xf32> to vector<8x256xf32>
    %102 = arith.mulf %101, %99 : vector<8x256xf32>
    %103 = arith.addf %97, %102 : vector<8x256xf32>
    %c0_35 = arith.constant 0 : index
    %c0_36 = arith.constant 0 : index
    %c0_37 = arith.constant 0 : index
    %104 = vector.load %arg3[%c0_35, %c0_36, %c0_37] : memref<2x8x256xf32, #tpu.memory_space<vmem>>, vector<1x8x256xf32>
    %105 = vector.shape_cast %104 : vector<1x8x256xf32> to vector<8x256xf32>
    %106 = vector.broadcast %4 : f32 to vector<8x256xf32>
    %107 = arith.mulf %105, %106 : vector<8x256xf32>
    %cst_38 = arith.constant 1.000000e+00 : f32
    %108 = vector.broadcast %cst_38 : f32 to vector<8x256xf32>
    %109 = arith.subf %107, %108 : vector<8x256xf32>
    %cst_39 = arith.constant 0.000000e+00 : f32
    %110 = vector.broadcast %cst_39 : f32 to vector<8x256xf32>
    %111 = arith.cmpf ogt, %109, %110 : vector<8x256xf32>
    %112 = arith.extui %111 : vector<8x256xi1> to vector<8x256xi32>
    %113 = arith.sitofp %112 : vector<8x256xi32> to vector<8x256xf32>
    %114 = vector.broadcast %3 : f32 to vector<8x256xf32>
    %115 = arith.mulf %114, %113 : vector<8x256xf32>
    %116 = vector.broadcast %5 : f32 to vector<8x256xf32>
    %117 = arith.mulf %116, %105 : vector<8x256xf32>
    %118 = arith.addf %117, %103 : vector<8x256xf32>
    %119 = arith.subf %118, %115 : vector<8x256xf32>
    %c0_40 = arith.constant 0 : index
    %c0_41 = arith.constant 0 : index
    %c0_42 = arith.constant 0 : index
    %120 = vector.load %arg14[%c0_40, %c0_41, %c0_42] : memref<2x8x256xf32, #tpu.memory_space<vmem>>, vector<1x8x256xf32>
    %121 = vector.shape_cast %120 : vector<1x8x256xf32> to vector<8x256xf32>
    %122 = vector.shape_cast %119 : vector<8x256xf32> to vector<1x8x256xf32>
    tpu.vector_store %arg14[%c0_40, %c0_41, %c0_42], %122 {strides = array<i32>} : memref<2x8x256xf32, #tpu.memory_space<vmem>>, vector<1x8x256xf32>,
    %c0_43 = arith.constant 0 : index
    %c0_44 = arith.constant 0 : index
    %c0_45 = arith.constant 0 : index
    %123 = vector.load %arg12[%c0_43, %c0_44, %c0_45] : memref<2x16x256xf32, #tpu.memory_space<vmem>>, vector<1x8x256xf32>
    %124 = vector.shape_cast %123 : vector<1x8x256xf32> to vector<8x256xf32>
    %125 = vector.shape_cast %109 : vector<8x256xf32> to vector<1x8x256xf32>
    tpu.vector_store %arg12[%c0_43, %c0_44, %c0_45], %125 {strides = array<i32>} : memref<2x16x256xf32, #tpu.memory_space<vmem>>, vector<1x8x256xf32>,
    %c0_46 = arith.constant 0 : index
    %c8 = arith.constant 8 : index
    %c0_47 = arith.constant 0 : index
    %126 = vector.load %arg12[%c0_46, %c8, %c0_47] : memref<2x16x256xf32, #tpu.memory_space<vmem>>, vector<1x8x256xf32>
    %127 = vector.shape_cast %126 : vector<1x8x256xf32> to vector<8x256xf32>
    %128 = vector.shape_cast %17 : vector<8x256xf32> to vector<1x8x256xf32>
    tpu.vector_store %arg12[%c0_46, %c8, %c0_47], %128 {strides = array<i32>} : memref<2x16x256xf32, #tpu.memory_space<vmem>>, vector<1x8x256xf32>,
    %c1_48 = arith.constant 1 : index
    %c0_49 = arith.constant 0 : index
    %c0_50 = arith.constant 0 : index
    %129 = vector.load %arg1[%c1_48, %c0_49, %c0_50] : memref<2x8x256xf32, #tpu.memory_space<vmem>>, vector<1x8x256xf32>
    %130 = vector.shape_cast %129 : vector<1x8x256xf32> to vector<8x256xf32>
    %131 = vector.broadcast %8 : vector<8x1xf32> to vector<8x256xf32>
    %132 = arith.mulf %130, %131 : vector<8x256xf32>
    %133 = vector.broadcast %9 : vector<8x1xf32> to vector<8x256xf32>
    %134 = arith.addf %132, %133 : vector<8x256xf32>
    %cst_51 = arith.constant 0.000000e+00 : f32
    %135 = vector.broadcast %cst_51 : f32 to vector<8x256xf32>
    %136 = arith.cmpf ogt, %134, %135 : vector<8x256xf32>
    %137 = arith.extui %136 : vector<8x256xi1> to vector<8x256xi32>
    %138 = arith.sitofp %137 : vector<8x256xi32> to vector<8x256xf32>
    %139 = arith.truncf %138 : vector<8x256xf32> to vector<8x256xbf16>
    %cst_52 = arith.constant dense<0.000000e+00> : vector<32x256xf32>
    %140 = tpu.matmul %6, %139, %cst_52 {dimension_numbers = #tpu.dot_dimension_numbers<[1], [0], [0], [1], [0, 0, 1, 1], [], []>} : vector<32x8xbf16>, vector<8x256xbf16>, vector<32x256xf32> -> vector<32x256xf32>
    %c1_53 = arith.constant 1 : index
    %c0_54 = arith.constant 0 : index
    %c0_55 = arith.constant 0 : index
    %141 = vector.load %arg2[%c1_53, %c0_54, %c0_55] : memref<2x32x256xf32, #tpu.memory_space<vmem>>, vector<1x32x256xf32>
    %142 = vector.shape_cast %141 : vector<1x32x256xf32> to vector<32x256xf32>
    %143 = vector.broadcast %1 : f32 to vector<32x256xf32>
    %144 = arith.mulf %142, %143 : vector<32x256xf32>
    %cst_56 = arith.constant 1.000000e+00 : f32
    %145 = vector.broadcast %cst_56 : f32 to vector<32x256xf32>
    %146 = arith.subf %144, %145 : vector<32x256xf32>
    %cst_57 = arith.constant 0.000000e+00 : f32
    %147 = vector.broadcast %cst_57 : f32 to vector<32x256xf32>
    %148 = arith.cmpf ogt, %146, %147 : vector<32x256xf32>
    %149 = arith.extui %148 : vector<32x256xi1> to vector<32x256xi32>
    %150 = arith.sitofp %149 : vector<32x256xi32> to vector<32x256xf32>
    %151 = vector.broadcast %0 : f32 to vector<32x256xf32>
    %152 = arith.mulf %151, %150 : vector<32x256xf32>
    %153 = vector.broadcast %2 : f32 to vector<32x256xf32>
    %154 = arith.mulf %153, %142 : vector<32x256xf32>
    %155 = arith.addf %154, %140 : vector<32x256xf32>
    %156 = arith.subf %155, %152 : vector<32x256xf32>
    %c1_58 = arith.constant 1 : index
    %c0_59 = arith.constant 0 : index
    %c0_60 = arith.constant 0 : index
    %157 = vector.load %arg13[%c1_58, %c0_59, %c0_60] : memref<2x32x256xf32, #tpu.memory_space<vmem>>, vector<1x32x256xf32>
    %158 = vector.shape_cast %157 : vector<1x32x256xf32> to vector<32x256xf32>
    %159 = vector.shape_cast %156 : vector<32x256xf32> to vector<1x32x256xf32>
    tpu.vector_store %arg13[%c1_58, %c0_59, %c0_60], %159 {strides = array<i32>} : memref<2x32x256xf32, #tpu.memory_space<vmem>>, vector<1x32x256xf32>,
    %160 = vector.broadcast %10 : vector<32x1xf32> to vector<32x256xf32>
    %161 = arith.mulf %146, %160 : vector<32x256xf32>
    %162 = vector.broadcast %11 : vector<32x1xf32> to vector<32x256xf32>
    %163 = arith.addf %161, %162 : vector<32x256xf32>
    %cst_61 = arith.constant 0.000000e+00 : f32
    %164 = vector.broadcast %cst_61 : f32 to vector<32x256xf32>
    %165 = arith.cmpf ogt, %163, %164 : vector<32x256xf32>
    %166 = arith.extui %165 : vector<32x256xi1> to vector<32x256xi32>
    %167 = arith.sitofp %166 : vector<32x256xi32> to vector<32x256xf32>
    %168 = arith.truncf %167 : vector<32x256xf32> to vector<32x256xbf16>
    %cst_62 = arith.constant dense<0.000000e+00> : vector<72x256xf32>
    %169 = tpu.matmul %7, %168, %cst_62 {dimension_numbers = #tpu.dot_dimension_numbers<[1], [0], [0], [1], [0, 0, 1, 1], [], []>} : vector<72x32xbf16>, vector<32x256xbf16>, vector<72x256xf32> -> vector<72x256xf32>
    %cst_63 = arith.constant 0.000000e+00 : f32
    %170 = vector.broadcast %cst_63 : f32 to vector<8x256xf32>
    %171 = vector.extract_strided_slice %169 {offsets = [0, 0], sizes = [8, 256], strides = [1, 1]} : vector<72x256xf32> to vector<8x256xf32>
    %c17_i32_64 = arith.constant 17 : i32
    %172 = tpu.dynamic_rotate %171 by %c17_i32_64 dim 1 : vector<8x256xf32>, i32 -> vector<8x256xf32>
    %173 = arith.mulf %12, %14 : vector<1x256xf32>
    %174 = vector.broadcast %173 : vector<1x256xf32> to vector<8x256xf32>
    %175 = arith.mulf %174, %172 : vector<8x256xf32>
    %176 = arith.addf %170, %175 : vector<8x256xf32>
    %177 = vector.extract_strided_slice %169 {offsets = [8, 0], sizes = [8, 256], strides = [1, 1]} : vector<72x256xf32> to vector<8x256xf32>
    %c16_i32_65 = arith.constant 16 : i32
    %178 = tpu.dynamic_rotate %177 by %c16_i32_65 dim 1 : vector<8x256xf32>, i32 -> vector<8x256xf32>
    %179 = vector.broadcast %12 : vector<1x256xf32> to vector<8x256xf32>
    %180 = arith.mulf %179, %178 : vector<8x256xf32>
    %181 = arith.addf %176, %180 : vector<8x256xf32>
    %182 = vector.extract_strided_slice %169 {offsets = [16, 0], sizes = [8, 256], strides = [1, 1]} : vector<72x256xf32> to vector<8x256xf32>
    %c15_i32_66 = arith.constant 15 : i32
    %183 = tpu.dynamic_rotate %182 by %c15_i32_66 dim 1 : vector<8x256xf32>, i32 -> vector<8x256xf32>
    %184 = arith.mulf %12, %15 : vector<1x256xf32>
    %185 = vector.broadcast %184 : vector<1x256xf32> to vector<8x256xf32>
    %186 = arith.mulf %185, %183 : vector<8x256xf32>
    %187 = arith.addf %181, %186 : vector<8x256xf32>
    %188 = vector.extract_strided_slice %169 {offsets = [24, 0], sizes = [8, 256], strides = [1, 1]} : vector<72x256xf32> to vector<8x256xf32>
    %c1_i32_67 = arith.constant 1 : i32
    %189 = tpu.dynamic_rotate %188 by %c1_i32_67 dim 1 : vector<8x256xf32>, i32 -> vector<8x256xf32>
    %190 = vector.broadcast %14 : vector<1x256xf32> to vector<8x256xf32>
    %191 = arith.mulf %190, %189 : vector<8x256xf32>
    %192 = arith.addf %187, %191 : vector<8x256xf32>
    %193 = vector.extract_strided_slice %169 {offsets = [32, 0], sizes = [8, 256], strides = [1, 1]} : vector<72x256xf32> to vector<8x256xf32>
    %194 = arith.addf %192, %193 : vector<8x256xf32>
    %195 = vector.extract_strided_slice %169 {offsets = [40, 0], sizes = [8, 256], strides = [1, 1]} : vector<72x256xf32> to vector<8x256xf32>
    %c255_i32_68 = arith.constant 255 : i32
    %196 = tpu.dynamic_rotate %195 by %c255_i32_68 dim 1 : vector<8x256xf32>, i32 -> vector<8x256xf32>
    %197 = vector.broadcast %15 : vector<1x256xf32> to vector<8x256xf32>
    %198 = arith.mulf %197, %196 : vector<8x256xf32>
    %199 = arith.addf %194, %198 : vector<8x256xf32>
    %200 = vector.extract_strided_slice %169 {offsets = [48, 0], sizes = [8, 256], strides = [1, 1]} : vector<72x256xf32> to vector<8x256xf32>
    %c241_i32_69 = arith.constant 241 : i32
    %201 = tpu.dynamic_rotate %200 by %c241_i32_69 dim 1 : vector<8x256xf32>, i32 -> vector<8x256xf32>
    %202 = arith.mulf %13, %14 : vector<1x256xf32>
    %203 = vector.broadcast %202 : vector<1x256xf32> to vector<8x256xf32>
    %204 = arith.mulf %203, %201 : vector<8x256xf32>
    %205 = arith.addf %199, %204 : vector<8x256xf32>
    %206 = vector.extract_strided_slice %169 {offsets = [56, 0], sizes = [8, 256], strides = [1, 1]} : vector<72x256xf32> to vector<8x256xf32>
    %c240_i32_70 = arith.constant 240 : i32
    %207 = tpu.dynamic_rotate %206 by %c240_i32_70 dim 1 : vector<8x256xf32>, i32 -> vector<8x256xf32>
    %208 = vector.broadcast %13 : vector<1x256xf32> to vector<8x256xf32>
    %209 = arith.mulf %208, %207 : vector<8x256xf32>
    %210 = arith.addf %205, %209 : vector<8x256xf32>
    %211 = vector.extract_strided_slice %169 {offsets = [64, 0], sizes = [8, 256], strides = [1, 1]} : vector<72x256xf32> to vector<8x256xf32>
    %c239_i32_71 = arith.constant 239 : i32
    %212 = tpu.dynamic_rotate %211 by %c239_i32_71 dim 1 : vector<8x256xf32>, i32 -> vector<8x256xf32>
    %213 = arith.mulf %13, %15 : vector<1x256xf32>
    %214 = vector.broadcast %213 : vector<1x256xf32> to vector<8x256xf32>
    %215 = arith.mulf %214, %212 : vector<8x256xf32>
    %216 = arith.addf %210, %215 : vector<8x256xf32>
    %c1_72 = arith.constant 1 : index
    %c0_73 = arith.constant 0 : index
    %c0_74 = arith.constant 0 : index
    %217 = vector.load %arg3[%c1_72, %c0_73, %c0_74] : memref<2x8x256xf32, #tpu.memory_space<vmem>>, vector<1x8x256xf32>
    %218 = vector.shape_cast %217 : vector<1x8x256xf32> to vector<8x256xf32>
    %219 = vector.broadcast %4 : f32 to vector<8x256xf32>
    %220 = arith.mulf %218, %219 : vector<8x256xf32>
    %cst_75 = arith.constant 1.000000e+00 : f32
    %221 = vector.broadcast %cst_75 : f32 to vector<8x256xf32>
    %222 = arith.subf %220, %221 : vector<8x256xf32>
    %cst_76 = arith.constant 0.000000e+00 : f32
    %223 = vector.broadcast %cst_76 : f32 to vector<8x256xf32>
    %224 = arith.cmpf ogt, %222, %223 : vector<8x256xf32>
    %225 = arith.extui %224 : vector<8x256xi1> to vector<8x256xi32>
    %226 = arith.sitofp %225 : vector<8x256xi32> to vector<8x256xf32>
    %227 = vector.broadcast %3 : f32 to vector<8x256xf32>
    %228 = arith.mulf %227, %226 : vector<8x256xf32>
    %229 = vector.broadcast %5 : f32 to vector<8x256xf32>
    %230 = arith.mulf %229, %218 : vector<8x256xf32>
    %231 = arith.addf %230, %216 : vector<8x256xf32>
    %232 = arith.subf %231, %228 : vector<8x256xf32>
    %c1_77 = arith.constant 1 : index
    %c0_78 = arith.constant 0 : index
    %c0_79 = arith.constant 0 : index
    %233 = vector.load %arg14[%c1_77, %c0_78, %c0_79] : memref<2x8x256xf32, #tpu.memory_space<vmem>>, vector<1x8x256xf32>
    %234 = vector.shape_cast %233 : vector<1x8x256xf32> to vector<8x256xf32>
    %235 = vector.shape_cast %232 : vector<8x256xf32> to vector<1x8x256xf32>
    tpu.vector_store %arg14[%c1_77, %c0_78, %c0_79], %235 {strides = array<i32>} : memref<2x8x256xf32, #tpu.memory_space<vmem>>, vector<1x8x256xf32>,
    %c1_80 = arith.constant 1 : index
    %c0_81 = arith.constant 0 : index
    %c0_82 = arith.constant 0 : index
    %236 = vector.load %arg12[%c1_80, %c0_81, %c0_82] : memref<2x16x256xf32, #tpu.memory_space<vmem>>, vector<1x8x256xf32>
    %237 = vector.shape_cast %236 : vector<1x8x256xf32> to vector<8x256xf32>
    %238 = vector.shape_cast %222 : vector<8x256xf32> to vector<1x8x256xf32>
    tpu.vector_store %arg12[%c1_80, %c0_81, %c0_82], %238 {strides = array<i32>} : memref<2x16x256xf32, #tpu.memory_space<vmem>>, vector<1x8x256xf32>,
    %c1_83 = arith.constant 1 : index
    %c8_84 = arith.constant 8 : index
    %c0_85 = arith.constant 0 : index
    %239 = vector.load %arg12[%c1_83, %c8_84, %c0_85] : memref<2x16x256xf32, #tpu.memory_space<vmem>>, vector<1x8x256xf32>
    %240 = vector.shape_cast %239 : vector<1x8x256xf32> to vector<8x256xf32>
    %241 = vector.shape_cast %130 : vector<8x256xf32> to vector<1x8x256xf32>
    tpu.vector_store %arg12[%c1_83, %c8_84, %c0_85], %241 {strides = array<i32>} : memref<2x16x256xf32, #tpu.memory_space<vmem>>, vector<1x8x256xf32>,
    return
  }
  func.func @transform_0(%arg0: i32) -> (i32, i32, i32) {
    %c0_i32 = arith.constant 0 : i32
    %c0_i32_0 = arith.constant 0 : i32
    %c0_i32_1 = arith.constant 0 : i32
    return %arg0, %c0_i32, %c0_i32_0 : i32, i32, i32
  }
  func.func @transform_1(%arg0: i32) -> (i32, i32, i32) {
    %c0_i32 = arith.constant 0 : i32
    %c0_i32_0 = arith.constant 0 : i32
    %c0_i32_1 = arith.constant 0 : i32
    return %arg0, %c0_i32, %c0_i32_0 : i32, i32, i32
  }
  func.func @transform_2(%arg0: i32) -> (i32, i32, i32) {
    %c0_i32 = arith.constant 0 : i32
    %c0_i32_0 = arith.constant 0 : i32
    %c0_i32_1 = arith.constant 0 : i32
    return %arg0, %c0_i32, %c0_i32_0 : i32, i32, i32
  }
  func.func @transform_3(%arg0: i32) -> (i32, i32) {
    %c0_i32 = arith.constant 0 : i32
    %c0_i32_0 = arith.constant 0 : i32
    %c0_i32_1 = arith.constant 0 : i32
    return %c0_i32, %c0_i32_0 : i32, i32
  }
  func.func @transform_4(%arg0: i32) -> (i32, i32) {
    %c0_i32 = arith.constant 0 : i32
    %c0_i32_0 = arith.constant 0 : i32
    %c0_i32_1 = arith.constant 0 : i32
    return %c0_i32, %c0_i32_0 : i32, i32
  }
  func.func @transform_5(%arg0: i32) -> (i32, i32) {
    %c0_i32 = arith.constant 0 : i32
    %c0_i32_0 = arith.constant 0 : i32
    %c0_i32_1 = arith.constant 0 : i32
    return %c0_i32, %c0_i32_0 : i32, i32
  }
  func.func @transform_6(%arg0: i32) -> (i32, i32) {
    %c0_i32 = arith.constant 0 : i32
    %c0_i32_0 = arith.constant 0 : i32
    %c0_i32_1 = arith.constant 0 : i32
    return %c0_i32, %c0_i32_0 : i32, i32
  }
  func.func @transform_7(%arg0: i32) -> (i32, i32) {
    %c0_i32 = arith.constant 0 : i32
    %c0_i32_0 = arith.constant 0 : i32
    %c0_i32_1 = arith.constant 0 : i32
    return %c0_i32, %c0_i32_0 : i32, i32
  }
  func.func @transform_8(%arg0: i32) -> (i32, i32) {
    %c0_i32 = arith.constant 0 : i32
    %c0_i32_0 = arith.constant 0 : i32
    %c0_i32_1 = arith.constant 0 : i32
    return %c0_i32, %c0_i32_0 : i32, i32
  }
  func.func @transform_9(%arg0: i32) -> (i32, i32) {
    %c0_i32 = arith.constant 0 : i32
    %c0_i32_0 = arith.constant 0 : i32
    %c0_i32_1 = arith.constant 0 : i32
    return %c0_i32, %c0_i32_0 : i32, i32
  }
  func.func @transform_10(%arg0: i32) -> i32 {
    %c0_i32 = arith.constant 0 : i32
    %c0_i32_0 = arith.constant 0 : i32
    return %c0_i32 : i32
  }
  func.func @transform_11(%arg0: i32) -> (i32, i32, i32) {
    %c0_i32 = arith.constant 0 : i32
    %c0_i32_0 = arith.constant 0 : i32
    %c0_i32_1 = arith.constant 0 : i32
    return %arg0, %c0_i32, %c0_i32_0 : i32, i32, i32
  }
  func.func @transform_12(%arg0: i32) -> (i32, i32, i32) {
    %c0_i32 = arith.constant 0 : i32
    %c0_i32_0 = arith.constant 0 : i32
    %c0_i32_1 = arith.constant 0 : i32
    return %arg0, %c0_i32, %c0_i32_0 : i32, i32, i32
  }
  func.func @transform_13(%arg0: i32) -> (i32, i32, i32) {
    %c0_i32 = arith.constant 0 : i32
    %c0_i32_0 = arith.constant 0 : i32
    %c0_i32_1 = arith.constant 0 : i32
    return %arg0, %c0_i32, %c0_i32_0 : i32, i32, i32
  }
}

</mosaic_0001>

<bundles_post_ra>
// kernel: bottleneck_forward.1
= control target key start
LH: loop header
LB: loop body
LE: loop exit
PB: predicated region body
PF: predicated region fallthrough
CT: control target
= control target key end

     0   :  { %19 = vsyncpa [#allocation3], 0  ;;  %s2070_s25 = smov 0   ;;  %s2791_s0 = inlined_call_operand.vmem [shape: f32[4,8,256], index: 0, kind: input, shape index: {}]   ;;  %s2792_s1 = inlined_call_operand.vmem [shape: f32[4,32,256], index: 1, kind: input, shape index: {}, may-alias: {1,12}]   ;;  %s2793_s2 = inlined_call_operand.vmem [shape: f32[4,8,256], index: 2, kind: input, shape index: {}, may-alias: {2,13}]   ;;  %s2794_s3 = inlined_call_operand.vmem [shape: bf16[32,8], index: 3, kind: input, shape index: {}]   ;;  %s2795_s4 = inlined_call_operand.vmem [shape: bf16[72,32], index: 4, kind: input, shape index: {}]   ;;  %s2796_s5 = inlined_call_operand.vmem [shape: f32[8,1], index: 5, kind: input, shape index: {}]   ;;  %s2797_s6 = inlined_call_operand.vmem [shape: f32[8,1], index: 6, kind: input, shape index: {}]   ;;  %s2798_s7 = inlined_call_operand.vmem [shape: f32[32,1], index: 7, kind: input, shape index: {}]   ;;  %s2799_s8 = inlined_call_operand.vmem [shape: f32[32,1], index: 8, kind: input, shape index: {}]   ;;  %s2800_s9 = inlined_call_operand.vmem [shape: f32[4,256], index: 9, kind: input, shape index: {}]   ;;  %s2801_s10 = inlined_call_operand.vmem [shape: f32[6], index: 10, kind: input, shape index: {}]   ;;  %s2802_s11 = inlined_call_operand.vmem [shape: f32[4,16,256], index: 11, kind: output, shape index: {0}]   ;;  %s2803_s12 = inlined_call_operand.vmem [shape: f32[4,32,256], index: 12, kind: output, shape index: {1}, may-alias: {1,12}]   ;;  %s2804_s13 = inlined_call_operand.vmem [shape: f32[4,8,256], index: 13, kind: output, shape index: {2}, may-alias: {2,13}]  }
   0x1 LB: > { %s1756_s26 = sadd.s32 4294967295, %s1986_s25   ;;  %p1758_p0 = scmp.ge.s32.totalorder %s1986_s25, 1  ;;  %s1986_s25 = sphi %s2070_s25, %s25_s25  }
   0x2   : > { %p354_p1 = scmp.lt.s32.totalorder %s1986_s25, 3  ;;  %s388_s29 = sshll.u32 %s2801_s10, 4  ;;  %s389_s29 = int_to_ptr.vmem [resolvable:$true] %s388_s29 }
   0x3   : > { %p2085_p3 = scmp.eq.s32.totalorder %s1756_s26, 0  ;;  %s1961_s15 = scalar_lea.vmem %s389_s29, 16 }
   0x4   : > { %p2081_p2 = pnand %p1758_p0, %p354_p1  ;;  %p1962_p6 = scmp.ne.s32.totalorder %s389_s29, %s1961_s15 }
   0x5   : > { %p1969_p10 = scmp.lt.s32.totalorder %s389_s29, %s389_s29  ;;  %p1970_p11 = scmp.lt.s32.totalorder %s1961_s15, %s1961_s15 }
   0x6   : > { %p1926_p4 = pneg %p2081_p2 }
   0x7   : > { %p1971_p12 = por %p1970_p11, %p1969_p10 }
   0x8   : > { %p1927_p5 = pnand %p2085_p3, %p1926_p4 }
   0xa   : > { %p1963_p7 = pneg %p1927_p5 }
   0xc   : > { %p1964_p8 = pnand %p1963_p7, %p1962_p6 }
   0xe   : > { %p1965_p9 = pneg %p1964_p8 }
  0x10   : > { %p1972_p13 = pnand %p1971_p12, %p1965_p9 }
  0x12   : > { %1975 = shalt.err (!%p1972_p13)
}
  0x13   : > { %s1988_s16 = smov [#allocation2]   ;;  %431 = sbr.rel (%p2081_p2) target bundleno = 827 (0x33b), region = 64 }
  0x14   : > { %1929 = dma.vmem_to_smem (!%p1927_p5), %s389_s29, 16, %s1988_s16, [#allocation3]  }
  0x1a   : > { %1981 = dma.done.wait (%p2085_p3), [#allocation3], 16  }
  0x1b   : > { %1983 = vsyncadd (%p2085_p3), [#allocation3], 4294967280 }
  0x1c   : > { %437 = sfence }
  0x1d   : > { %v566_v0 = vld [vmem:[%s2798_s7] sm:$0xff]  ;;  %s1763_s21 = sshll.u32 %s1756_s26, 1  ;;  %v1989_v2 = vmov 0   ;;  %v567_v3 = vld [vmem:[%s2798_s7 + $0x8] sm:$0xff]  ;;  %v569_v11 = vld [vmem:[%s2798_s7 + $0x18] sm:$0xff]  ;;  %vm622_vm0 = vcmask 1043456  }
  0x1e   : > { %v564_v1 = vld [vmem:[%s2796_s5] sm:$0xff]  ;;  %1953 = vset.pattern.permute.xlu1 %v1989_v2  ;;  %1952 = vset.pattern.permute.xlu0 %v1989_v2  ;;  %p503_p0 = scmp.lt.s32.totalorder %s1763_s21, 3  ;;  %v571_v5 = vld [vmem:[%s2799_s8 + $0x8] sm:$0xff]  ;;  %v568_v12 = vld [vmem:[%s2798_s7 + $0x10] sm:$0xff]  ;;  %v1990_v56 = vmov 0.0   ;;  %vm615_vm8 = vcmask 64512  }
  0x1f   : > { %775 = vperm.xlu1 %1953, %v566_v0   ;;  %585 = vperm.xlu0 %1952, %v564_v1   ;;  %v565_v4 = vld [vmem:[%s2797_s6] sm:$0xff]  ;;  %v573_v13 = vld [vmem:[%s2799_s8 + $0x18] sm:$0xff]  ;;  %v572_v14 = vld [vmem:[%s2799_s8 + $0x10] sm:$0xff]  ;;  %s1782_s28 = sld [smem:[#allocation2 + $0x2]]  ;;  %s545_s29 = sld [smem:[#allocation2]] }
  0x20   : > { %s2811_s21 = smov (!%p503_p0, %s1763_s21), 3  ;;  %661 = vmatprep.mubr.bf16.mxu1 %v1989_v2  ;;  %1243 = vmatprep.mubr.bf16.mxu0 %v1989_v2  ;;  %v570_v6 = vld [vmem:[%s2799_s8] sm:$0xff]  ;;  %s1784_s19 = sld [smem:[#allocation2 + $0x4]] }
  0x21   : > { %s2118_s26 = sshll.u32 %s2811_s21, 4  ;;  %s1919_s18 = sshll.u32 %s2811_s21, 5 }
  0x22   : > { %s507_s30 = scalar_lea.vmem %s2791_s0, %s2118_s26  ;;  %s2134_s22 = scalar_lea.vmem %s2802_s11, %s1919_s18 }
  0x23   : > { %780 = vperm.xlu1 %1953, %v567_v3   ;;  %592 = vperm.xlu0 %1952, %v565_v4   ;;  %v581_v7 = vld [vmem:[%s507_s30] sm:$0xff]  ;;  %v1842_v8 = vld [vmem:[%s507_s30 + $0x10] sm:$0xff]  ;;  %v582_v9 = vld [vmem:[%s507_s30 + $0x8] sm:$0xff]  ;;  %s1917_s17 = sshll.u32 %s2811_s21, 6  ;;  %s1992_s21 = smov 17  }
  0x24   : > { %1188 = vst [vmem:[%s2134_s22 + $0x10] sm:$0xff] %v581_v7  ;;  %1912 = vst [vmem:[%s2134_s22 + $0x30] sm:$0xff] %v1842_v8  ;;  %v1843_v10 = vld [vmem:[%s507_s30 + $0x18] sm:$0xff]  ;;  %s1781_s30 = sld [smem:[#allocation2 + $0x1]]  ;;  %s2158_s20 = scalar_lea.vmem %s2792_s1, %s1917_s17 }
  0x25   : > { %1189 = vst [vmem:[%s2134_s22 + $0x18] sm:$0xff] %v582_v9  ;;  %1913 = vst [vmem:[%s2134_s22 + $0x38] sm:$0xff] %v1843_v10  ;;  %v2163_v16 = vld [vmem:[%s2158_s20 + $0x10] sm:$0xff]  ;;  %v2166_v17 = vld [vmem:[%s2158_s20] sm:$0xff]  ;;  %s2357_s16 = scalar_lea.vmem %s2803_s12, %s1917_s17  ;;  %s1993_s17 = smov 16  }
  0x26   : > { %v2169_v18 = vld [vmem:[%s2158_s20 + $0x8] sm:$0xff]  ;;  %v2172_v19 = vld [vmem:[%s2158_s20 + $0x18] sm:$0xff]  ;;  %v2183_v24 = vld [vmem:[%s2158_s20 + $0x20] sm:$0xff]  ;;  %s1996_s18 = smov 127   ;;  %s2499_s27 = scalar_lea.vmem %s2793_s2, %s2118_s26 }
  0x27   : > { %808 = vperm.xlu1 %1953, %v571_v5   ;;  %803 = vperm.xlu0 %1952, %v570_v6   ;;  %v2188_v27 = vld [vmem:[%s2158_s20 + $0x30] sm:$0xff]  ;;  %v2191_v28 = vld [vmem:[%s2158_s20 + $0x28] sm:$0xff]  ;;  %v2196_v30 = vld [vmem:[%s2158_s20 + $0x38] sm:$0xff]  ;;  %s2805_s14 = smov 111  }
  0x2a   : > { %v2160_v15 = vstv %s1781_s30  ;;  %s1994_s30 = smov 15  }
  0x2b   : > { %790 = vperm.xlu1 %1953, %v569_v11   ;;  %785 = vperm.xlu0 %1952, %v568_v12   ;;  %v693_v20 = vmul.f32 %v2160_v15, %v2163_v16  ;;  %v691_v21 = vmul.f32 %v2160_v15, %v2166_v17  ;;  %v692_v22 = vmul.f32 %v2160_v15, %v2169_v18 }
  0x2c   : > { %v694_v23 = vmul.f32 %v2160_v15, %v2172_v19  ;;  %v695_v31 = vmul.f32 %v2160_v15, %v2183_v24  ;;  %v697_v37 = vmul.f32 %v2160_v15, %v2188_v27  ;;  %v696_v38 = vmul.f32 %v2160_v15, %v2191_v28 }
  0x2d   : > { %v2193_v29 = vadd.f32 -1.0, %v693_v20  ;;  %v2200_v32 = vadd.f32 -1.0, %v691_v21  ;;  %v2202_v33 = vadd.f32 -1.0, %v692_v22  ;;  %v698_v43 = vmul.f32 %v2160_v15, %v2196_v30 }
  0x2e   : > { %v2204_v34 = vadd.f32 -1.0, %v694_v23  ;;  %v2216_v47 = vadd.f32 -1.0, %v695_v31  ;;  %v2224_v53 = vadd.f32 -1.0, %v697_v37  ;;  %v2242_v5 = vadd.f32 -1.0, %v696_v38  ;;  %v1955_v38 = vld [vmem:[%s2794_s3 + $0x8] sm:$0xff]  }
  0x2f   : > { %818 = vperm.xlu1 %1953, %v573_v13   ;;  %813 = vperm.xlu0 %1952, %v572_v14   ;;  %v2233_v62 = vadd.f32 -1.0, %v698_v43  ;;  %v1954_v14 = vld [vmem:[%s2794_s3] sm:$0xff]   ;;  %v1991_v22 = vmov 1.0|1.0   ;;  %v2312_v43 = vld [vmem:[%s2795_s4 + $0x18] sm:$0xff]  }
  0x9e   : > { %v2185_v25 = vpop.permute.xlu1 %775  ;;  %v586_v26 = vpop.permute.xlu0 %585 }
  0x9f   : > { %v589_v35 = vmul.f32 %v586_v26, %v582_v9  ;;  %v1194_v36 = vmul.f32 %v1843_v10, %v586_v26  ;;  %v588_v39 = vmul.f32 %v586_v26, %v581_v7  ;;  %v1193_v40 = vmul.f32 %v1842_v8, %v586_v26 }
  0xa0   : > { %v794_v48 = vmul.f32 %v2202_v33, %v2185_v25  ;;  %v793_v52 = vmul.f32 %v2200_v32, %v2185_v25 }
  0xa2   : > { %v2210_v41 = vpop.permute.xlu1 %780  ;;  %v593_v42 = vpop.permute.xlu0 %592 }
  0xa3   : > { %v795_v44 = vmul.f32 %v2193_v29, %v2210_v41  ;;  %v596_v45 = vadd.f32 %v593_v42, %v589_v35  ;;  %v1196_v46 = vadd.f32 %v1194_v36, %v593_v42  ;;  %v796_v49 = vmul.f32 %v2204_v34, %v2210_v41 }
  0xa4   : > { %v595_v50 = vadd.f32 %v593_v42, %v588_v39  ;;  %v1195_v51 = vadd.f32 %v1193_v40, %v593_v42  ;;  %v2288_v39 = vld [vmem:[%s2795_s4] sm:$0xff]   ;;  %v2296_v40 = vld [vmem:[%s2795_s4 + $0x8] sm:$0xff]   ;;  %v2304_v42 = vld [vmem:[%s2795_s4 + $0x10] sm:$0xff]  }
  0xa5   : > { %vm598_vm1 = vcmp.gt.f32.partialorder %v596_v45, 0.0  ;;  %vm1198_vm2 = vcmp.gt.f32.partialorder %v1196_v46, 0.0  ;;  %v2325_v45 = vstv %s1782_s28  ;;  %s1997_s28 = smov 113  }
  0xa6   : > { %v2226_v54 = vpop.permute.xlu1 %808  ;;  %v2228_v55 = vpop.permute.xlu0 %803  ;;  %v1790_v57 = vsel %vm598_vm1, 1.0, %v1990_v56  ;;  %v1845_v58 = vsel %vm1198_vm2, 1.0, %v1990_v56  ;;  %vm597_vm3 = vcmp.gt.f32.partialorder %v595_v50, 0.0  ;;  %vm1197_vm4 = vcmp.gt.f32.partialorder %v1195_v51, 0.0 }
  0xa7   : > { %v823_v59 = vadd.f32 %v2226_v54, %v795_v44  ;;  %v604_v60 = vpack.c.bf16 %v1790_v57, %v1790_v57  ;;  %v1204_v61 = vpack.c.bf16 %v1845_v58, %v1845_v58  ;;  %v1789_v63 = vsel %vm597_vm3, 1.0, %v1990_v56  ;;  %v2320_v44 = vld [vmem:[%s2795_s4 + $0x20] ss:$0 sps:$4 sm:$0xff]  }
  0xa8   : > { %v1844_v0 = vsel %vm1197_vm4, 1.0, %v1990_v56  ;;  %v822_v1 = vadd.f32 %v2228_v55, %v794_v48  ;;  %v824_v3 = vadd.f32 %v2226_v54, %v796_v49  ;;  %v821_v4 = vadd.f32 %v2228_v55, %v793_v52 }
  0xa9   : > { %1793 = vmatprep.subr.msk.bf16.mxu1 %vm622_vm0, %v604_v60  ;;  %1846 = vmatprep.subr.msk.bf16.mxu0 %vm622_vm0, %v1204_v61  ;;  %v603_v6 = vpack.c.bf16 %v1789_v63, %v1789_v63  ;;  %v1203_v7 = vpack.c.bf16 %v1844_v0, %v1844_v0  ;;  %vm831_vm9 = vcmp.gt.f32.partialorder %v823_v59, 0.0  ;;  %vm880_vm2 = vcmask 261120  }
  0xaa   : > { %v2244_v8 = vpop.permute.xlu1 %790  ;;  %v2246_v9 = vpop.permute.xlu0 %785  ;;  %vm830_vm5 = vcmp.gt.f32.partialorder %v822_v1, 0.0  ;;  %vm832_vm6 = vcmp.gt.f32.partialorder %v824_v3, 0.0  ;;  %vm829_vm10 = vcmp.gt.f32.partialorder %v821_v4, 0.0  ;;  %vm707_vm3 = vcmp.gt.f32.partialorder %v2200_v32, 0.0 }
  0xab   : > { %v799_v10 = vmul.f32 %v2224_v53, %v2244_v8  ;;  %v800_v11 = vmul.f32 %v2233_v62, %v2244_v8  ;;  %vm1825_vm7 = vmpackc.low %vm832_vm6, %vm830_vm5  ;;  %v624_v12 = vsel %vm622_vm0, %v603_v6, 0  ;;  %v1206_v13 = vsel %vm622_vm0, %v1203_v7, 0 }
  0xac   : > { %v797_v20 = vmul.f32 %v2216_v47, %v2246_v9  ;;  %v798_v21 = vmul.f32 %v2242_v5, %v2246_v9  ;;  %630 = vmatpush1.bf16.msra.mxu1 %v624_v12  ;;  %1212 = vmatpush1.bf16.msra.mxu0 %v1206_v13  ;;  %vm1827_vm11 = vmpackc.low %vm831_vm9, %vm829_vm10  ;;  %vm708_vm4 = vcmp.gt.f32.partialorder %v2202_v33, 0.0  ;;  %vm709_vm5 = vcmp.gt.f32.partialorder %v2193_v29, 0.0 }
  0xad   : > { %1826 = vmatprep.subr.msk.bf16.mxu1 %vm1825_vm7, %v1991_v22  ;;  %v1804_v46 = vsel %vm707_vm3, 1.0, %v1990_v56  ;;  %v2330_v48 = vstv %s545_s29  ;;  %vm710_vm6 = vcmp.gt.f32.partialorder %v2204_v34, 0.0  ;;  %v741_v49 = vmul.f32 %v2325_v45, %v2166_v17  ;;  %s1998_s29 = smov 112  }
  0xae   : > { %v2262_v23 = vpop.permute.xlu1 %818  ;;  %v2264_v26 = vpop.permute.xlu0 %813  ;;  %v1805_v50 = vsel %vm708_vm4, 1.0, %v1990_v56  ;;  %v742_v32 = vmul.f32 %v2325_v45, %v2169_v18  ;;  %v1806_v51 = vsel %vm709_vm5, 1.0, %v1990_v56  ;;  %v732_v33 = vmul.f32 %v1804_v46, %v2330_v48 }
  0xaf   : > { %v827_v31 = vadd.f32 %v2262_v23, %v799_v10  ;;  %v825_v35 = vadd.f32 %v2264_v26, %v797_v20  ;;  %v826_v36 = vadd.f32 %v2264_v26, %v798_v21  ;;  %v828_v37 = vadd.f32 %v2262_v23, %v800_v11  ;;  %1794 = vmatmul.mubr.msk.bf16.vlgmr.msra.gmra.mrb[0].mxu1 %vm615_vm8, %v1954_v14 }
  0xb0   : > { %1847 = vmatmul.mubr.msk.bf16.vlgmr.msra.gmra.mrb[0].mxu0 %vm615_vm8, %v1954_v14  ;;  %1828 = vmatpush1.bf16.msk.msra.mxu1 %vm1827_vm11, %v1991_v22  ;;  %v743_v29 = vmul.f32 %v2325_v45, %v2163_v16  ;;  %v1807_v52 = vsel %vm710_vm6, 1.0, %v1990_v56  ;;  %v733_v34 = vmul.f32 %v1805_v50, %v2330_v48  ;;  %v744_v17 = vmul.f32 %v2325_v45, %v2172_v19 }
  0xb1   : > { %vm835_vm12 = vcmp.gt.f32.partialorder %v827_v31, 0.0  ;;  %vm833_vm13 = vcmp.gt.f32.partialorder %v825_v35, 0.0  ;;  %vm834_vm14 = vcmp.gt.f32.partialorder %v826_v36, 0.0  ;;  %vm836_vm15 = vcmp.gt.f32.partialorder %v828_v37, 0.0  ;;  %671 = vmatprep.mubr.bf16.mxu1 %v1989_v2  ;;  %1253 = vmatprep.mubr.bf16.mxu0 %v1989_v2 }
  0xb2   : > { %vm1829_vm0 = vmpackc.low %vm836_vm15, %vm834_vm14  ;;  %v734_v18 = vmul.f32 %v1806_v51, %v2330_v48  ;;  %vm711_vm7 = vcmp.gt.f32.partialorder %v2216_v47, 0.0  ;;  %v735_v19 = vmul.f32 %v1807_v52, %v2330_v48  ;;  %vm713_vm9 = vcmp.gt.f32.partialorder %v2224_v53, 0.0 }
  0xb3   : > { %1830 = vmatprep.subr.msk.bf16.mxu1 %vm1829_vm0, %v1991_v22  ;;  %vm1831_vm1 = vmpackc.low %vm835_vm12, %vm833_vm13  ;;  %v1808_v10 = vsel %vm711_vm7, 1.0, %v1990_v56  ;;  %vm714_vm10 = vcmp.gt.f32.partialorder %v2233_v62, 0.0  ;;  %v746_v53 = vmul.f32 %v2325_v45, %v2191_v28  ;;  %v1810_v14 = vsel %vm713_vm9, 1.0, %v1990_v56 }
  0xb4   : > { %1832 = vmatpush1.bf16.msk.msra.mxu1 %vm1831_vm1, %v1991_v22  ;;  %v736_v20 = vmul.f32 %v1808_v10, %v2330_v48  ;;  %v747_v62 = vmul.f32 %v2325_v45, %v2188_v27  ;;  %v1811_v21 = vsel %vm714_vm10, 1.0, %v1990_v56  ;;  %v748_v35 = vmul.f32 %v2325_v45, %v2196_v30 }
  0xb5   : > { %v739_v50 = vmul.f32 %v1811_v21, %v2330_v48 }
  0xb7   : > { %1795 = vmatmul.mubr.msk.bf16.gmra.mrb[4].mxu1 %vm615_vm8, %v1955_v38 }
  0xb8   : > { %1848 = vmatmul.mubr.msk.bf16.gmra.mrb[4].mxu0 %vm615_vm8, %v1955_v38  ;;  %928 = vmatprep.mubr.bf16.mxu1 %v1989_v2  ;;  %vm712_vm8 = vcmp.gt.f32.partialorder %v2242_v5, 0.0  ;;  %v745_v5 = vmul.f32 %v2325_v45, %v2183_v24  ;;  %v738_v38 = vmul.f32 %v1810_v14, %v2330_v48 }
  0xb9   : > { %1430 = vmatprep.mubr.bf16.mxu0 %v1989_v2  ;;  %v1809_v12 = vsel %vm712_vm8, 1.0, %v1990_v56 }
  0xba   : > { %v737_v24 = vmul.f32 %v1809_v12, %v2330_v48 }
  0xbf   : > { %1833 = vmatmul.mubr.msk.bf16.vlgmr.msra.gmra.mrb[8].mxu1 %vm880_vm2, %v2288_v39 }
  0xc0   : > { %938 = vmatprep.mubr.bf16.mxu1 %v1989_v2 }
  0xc7   : > { %1834 = vmatmul.mubr.msk.bf16.gmra.mrb[12].mxu1 %vm880_vm2, %v2296_v40 }
  0xc8   : > { %948 = vmatprep.mubr.bf16.mxu1 %v1989_v2 }
  0xcf   : > { %1835 = vmatmul.mubr.msk.bf16.gmra.mrb[16].mxu1 %vm880_vm2, %v2304_v42 }
  0xd0   : > { %958 = vmatprep.mubr.bf16.mxu1 %v1989_v2 }
  0xd7   : > { %1836 = vmatmul.mubr.msk.bf16.gmra.mrb[20].mxu1 %vm880_vm2, %v2312_v43 }
  0xd8   : > { %968 = vmatprep.mubr.bf16.mxu1 %v1989_v2 }
  0xdf   : > { %1837 = vmatmul.mubr.msk.bf16.gmra.mrb[24].mxu1 %vm880_vm2, %v2320_v44 }
 0x182   : > { %v663_v57 = vpop.f32.mrb[0].mxu1 }
 0x183   : > { %v2346_v58 = vpop.f32.mrb[0].mxu0  ;;  %v749_v59 = vadd.f32 %v741_v49, %v663_v57  ;;  %v665_v60 = vpop.f32.mrb[1].mxu1 }
 0x184   : > { %v2350_v61 = vpop.f32.mrb[1].mxu0  ;;  %v750_v16 = vadd.f32 %v742_v32, %v665_v60  ;;  %v667_v63 = vpop.f32.mrb[2].mxu1 }
 0x185   : > { %v2361_v0 = vpop.f32.mrb[2].mxu0  ;;  %v757_v1 = vsub.f32 %v749_v59, %v732_v33  ;;  %v751_v47 = vadd.f32 %v743_v29, %v667_v63  ;;  %v669_v3 = vpop.f32.mrb[3].mxu1 }
 0x186   : > { %v2364_v4 = vpop.f32.mrb[3].mxu0  ;;  %v758_v6 = vsub.f32 %v750_v16, %v733_v34  ;;  %v752_v7 = vadd.f32 %v744_v17, %v669_v3 }
 0x187   : > { %765 = vst [vmem:[%s2357_s16] sm:$0xff] %v757_v1  ;;  %v759_v11 = vsub.f32 %v751_v47, %v734_v18 }
 0x188   : > { %766 = vst [vmem:[%s2357_s16 + $0x8] sm:$0xff] %v758_v6  ;;  %v760_v13 = vsub.f32 %v752_v7, %v735_v19 }
 0x189   : > { %767 = vst [vmem:[%s2357_s16 + $0x10] sm:$0xff] %v759_v11 }
 0x18a   : > { %768 = vst [vmem:[%s2357_s16 + $0x18] sm:$0xff] %v760_v13  ;;  %v673_v31 = vpop.f32.mrb[4].mxu1 }
 0x18b   : > { %v2385_v36 = vpop.f32.mrb[4].mxu0  ;;  %v753_v28 = vadd.f32 %v745_v5, %v673_v31  ;;  %v675_v37 = vpop.f32.mrb[5].mxu1 }
 0x18c   : > { %v2388_v46 = vpop.f32.mrb[5].mxu0  ;;  %v754_v27 = vadd.f32 %v746_v53, %v675_v37  ;;  %v677_v49 = vpop.f32.mrb[6].mxu1 }
 0x18d   : > { %v2391_v32 = vpop.f32.mrb[6].mxu0  ;;  %v761_v51 = vsub.f32 %v753_v28, %v736_v20  ;;  %v755_v30 = vadd.f32 %v747_v62, %v677_v49  ;;  %v679_v33 = vpop.f32.mrb[7].mxu1 }
 0x18e   : > { %v2393_v29 = vpop.f32.mrb[7].mxu0  ;;  %v762_v52 = vsub.f32 %v754_v27, %v737_v24  ;;  %v756_v57 = vadd.f32 %v748_v35, %v679_v33 }
 0x18f   : > { %v763_v17 = vsub.f32 %v755_v30, %v738_v38 }
 0x190   : > { %v764_v16 = vsub.f32 %v756_v57, %v739_v50 }
 0x191   : > { %v1849_v34 = vld [vmem:[%s2158_s20 + $0x40] sm:$0xff] }
 0x192   : > { %769 = vst [vmem:[%s2357_s16 + $0x20] sm:$0xff] %v761_v51  ;;  %v1273_v59 = vmul.f32 %v1849_v34, %v2160_v15  ;;  %v1321_v60 = vmul.f32 %v1849_v34, %v2325_v45  ;;  %v930_v53 = vpop.f32.mrb[8].mxu1 }
 0x193   : > { %v932_v62 = vpop.f32.mrb[9].mxu1  ;;  %977 = vrot.lane.b32.xlu0 %v930_v53, %s1992_s21 }
 0x194   : > { %v1857_v47 = vadd.f32 -1.0, %v1273_v59  ;;  %v1329_v3 = vadd.f32 %v1321_v60, %v2346_v58  ;;  %979 = vrot.lane.b32.xlu1 %v932_v62, %s1992_s21  ;;  %v934_v24 = vpop.f32.mrb[10].mxu1 }
 0x195   : > { %v936_v37 = vpop.f32.mrb[11].mxu1 }
 0x196   : > { %vm1289_vm11 = vcmp.gt.f32.partialorder %v1857_v47, 0.0  ;;  %v2417_v58 = vmul.f32 %v1857_v47, %v2185_v25 }
 0x197   : > { %1002 = vrot.lane.b32.xlu0 %v934_v24, %s1993_s17 }
 0x198   : > { %1004 = vrot.lane.b32.xlu1 %v936_v37, %s1993_s17 }
 0x199   : > { %v1850_v18 = vld [vmem:[%s2158_s20 + $0x48] sm:$0xff] }
 0x19a   : > { %770 = vst [vmem:[%s2357_s16 + $0x28] sm:$0xff] %v762_v52  ;;  %v1274_v63 = vmul.f32 %v1850_v18, %v2160_v15  ;;  %v1322_v19 = vmul.f32 %v1850_v18, %v2325_v45 }
 0x19c   : > { %v1858_v11 = vadd.f32 -1.0, %v1274_v63  ;;  %v1330_v5 = vadd.f32 %v1322_v19, %v2350_v61  ;;  %v1865_v61 = vsel %vm1289_vm11, 1.0, %v1990_v56 }
 0x19e   : > { %vm1290_vm12 = vcmp.gt.f32.partialorder %v1858_v11, 0.0  ;;  %v1355_v28 = vmul.f32 %v1858_v11, %v2185_v25 }
 0x19f   : > { %v1866_v35 = vsel %vm1290_vm12, 1.0, %v1990_v56 }
 0x1a0   : > { %v1314_v38 = vmul.f32 %v1866_v35, %v2330_v48 }
 0x1a1   : > { %v1851_v1 = vld [vmem:[%s2158_s20 + $0x50] sm:$0xff] }
 0x1a2   : > { %771 = vst [vmem:[%s2357_s16 + $0x30] sm:$0xff] %v763_v17  ;;  %v1275_v6 = vmul.f32 %v1851_v1, %v2160_v15  ;;  %v1323_v7 = vmul.f32 %v1851_v1, %v2325_v45  ;;  %v1338_v52 = vsub.f32 %v1330_v5, %v1314_v38 }
 0x1a4   : > { %v2413_v14 = vadd.f32 -1.0, %v1275_v6  ;;  %v1331_v20 = vadd.f32 %v1323_v7, %v2361_v0  ;;  %v1313_v0 = vmul.f32 %v1865_v61, %v2330_v48  ;;  %v940_v7 = vpop.f32.mrb[12].mxu1 }
 0x1a5   : > { %1024 = vrot.lane.b32.xlu0 %v940_v7, %s1994_s30 }
 0x1a6   : > { %vm1291_vm13 = vcmp.gt.f32.partialorder %v2413_v14, 0.0  ;;  %v1337_v50 = vsub.f32 %v1329_v3, %v1313_v0 }
 0x1a7   : > { %v1867_v27 = vsel %vm1291_vm13, 1.0, %v1990_v56 }
 0x1a8   : > { %v1315_v51 = vmul.f32 %v1867_v27, %v2330_v48 }
 0x1a9   : > { %v1852_v10 = vld [vmem:[%s2158_s20 + $0x58] sm:$0xff] }
 0x1aa   : > { %772 = vst [vmem:[%s2357_s16 + $0x38] sm:$0xff] %v764_v16  ;;  %v1276_v12 = vmul.f32 %v1852_v10, %v2160_v15  ;;  %v1324_v13 = vmul.f32 %v1852_v10, %v2325_v45  ;;  %v1339_v60 = vsub.f32 %v1331_v20, %v1315_v51 }
 0x1ac   : > { %v1860_v21 = vadd.f32 -1.0, %v1276_v12  ;;  %v1332_v31 = vadd.f32 %v1324_v13, %v2364_v4  ;;  %v942_v12 = vpop.f32.mrb[13].mxu1 }
 0x1ad   : > { %1026 = vrot.lane.b32.xlu1 %v942_v12, %s1994_s30  ;;  %v944_v20 = vpop.f32.mrb[14].mxu1 }
 0x1ae   : > { %vm1292_vm14 = vcmp.gt.f32.partialorder %v1860_v21, 0.0  ;;  %v1357_v49 = vmul.f32 %v1860_v21, %v2210_v41  ;;  %v946_v61 = vpop.f32.mrb[15].mxu1 }
 0x1af   : > { %v1868_v30 = vsel %vm1292_vm14, 1.0, %v1990_v56 }
 0x1b0   : > { %v1316_v57 = vmul.f32 %v1868_v30, %v2330_v48  ;;  %v1365_v35 = vadd.f32 %v1357_v49, %v2226_v54 }
 0x1b1   : > { %v1853_v4 = vld [vmem:[%s2158_s20 + $0x60] sm:$0xff]  ;;  %v1854_v25 = vld [vmem:[%s2158_s20 + $0x68] sm:$0xff]  ;;  %v1855_v59 = vld [vmem:[%s2158_s20 + $0x70] sm:$0xff] }
 0x1b2   : > { %v1277_v33 = vmul.f32 %v1853_v4, %v2160_v15  ;;  %v1325_v34 = vmul.f32 %v1853_v4, %v2325_v45  ;;  %v1278_v17 = vmul.f32 %v1854_v25, %v2160_v15  ;;  %1873 = vst [vmem:[%s2357_s16 + $0x40] sm:$0xff] %v1337_v50  ;;  %v1326_v16 = vmul.f32 %v1854_v25, %v2325_v45 }
 0x1b3   : > { %v1279_v63 = vmul.f32 %v1855_v59, %v2160_v15  ;;  %v1340_v1 = vsub.f32 %v1332_v31, %v1316_v57  ;;  %v1327_v6 = vmul.f32 %v1855_v59, %v2325_v45  ;;  %vm1373_vm5 = vcmp.gt.f32.partialorder %v1365_v35, 0.0  ;;  %v2507_v57 = vld [vmem:[%s2499_s27 + $0x8] sm:$0xff] }
 0x1b4   : > { %v1861_v18 = vadd.f32 -1.0, %v1277_v33  ;;  %v1333_v47 = vadd.f32 %v1325_v34, %v2385_v36  ;;  %v1862_v3 = vadd.f32 -1.0, %v1278_v17  ;;  %v1334_v10 = vadd.f32 %v1326_v16, %v2388_v46 }
 0x1b5   : > { %v1863_v11 = vadd.f32 -1.0, %v1279_v63  ;;  %v1335_v36 = vadd.f32 %v1327_v6, %v2391_v32  ;;  %v1363_v32 = vadd.f32 %v1355_v28, %v2228_v55  ;;  %v1362_v4 = vadd.f32 %v2417_v58, %v2228_v55 }
 0x1b6   : > { %vm1293_vm15 = vcmp.gt.f32.partialorder %v1861_v18, 0.0  ;;  %vm1294_vm0 = vcmp.gt.f32.partialorder %v1862_v3, 0.0  ;;  %v1359_v50 = vmul.f32 %v1862_v3, %v2246_v9  ;;  %v2512_v59 = vstv %s1784_s19  ;;  %s1783_s19 = sld [smem:[#allocation2 + $0x3]] }
 0x1b7   : > { %v1869_v13 = vsel %vm1293_vm15, 1.0, %v1990_v56  ;;  %v1870_v62 = vsel %vm1294_vm0, 1.0, %v1990_v56  ;;  %vm1295_vm1 = vcmp.gt.f32.partialorder %v1863_v11, 0.0  ;;  %vm1371_vm4 = vcmp.gt.f32.partialorder %v1363_v32, 0.0 }
 0x1b8   : > { %v1317_v46 = vmul.f32 %v1869_v13, %v2330_v48  ;;  %v1318_v21 = vmul.f32 %v1870_v62, %v2330_v48  ;;  %v1871_v31 = vsel %vm1295_vm1, 1.0, %v1990_v56  ;;  %vm1889_vm6 = vmpackc.low %vm1373_vm5, %vm1371_vm4  ;;  %vm1370_vm7 = vcmp.gt.f32.partialorder %v1362_v4, 0.0 }
 0x1b9   : > { %v1856_v19 = vld [vmem:[%s2158_s20 + $0x78] sm:$0xff]  ;;  %v1319_v0 = vmul.f32 %v1871_v31, %v2330_v48  ;;  %s1995_s20 = smov 1   ;;  %1890 = vmatprep.subr.msk.bf16.mxu0 %vm1889_vm6, %v1991_v22  ;;  %v1360_v55 = vmul.f32 %v1863_v11, %v2244_v8 }
 0x1ba   : > { %1874 = vst [vmem:[%s2357_s16 + $0x48] sm:$0xff] %v1338_v52  ;;  %1875 = vst [vmem:[%s2357_s16 + $0x50] sm:$0xff] %v1339_v60  ;;  %v1280_v5 = vmul.f32 %v1856_v19, %v2160_v15  ;;  %v1328_v53 = vmul.f32 %v1856_v19, %v2325_v45  ;;  %v1341_v45 = vsub.f32 %v1333_v47, %v1317_v46  ;;  %1047 = vrot.lane.b32.xlu0 %v944_v20, %s1995_s20  ;;  %v981_v47 = vlaneseq }
 0x1bb   : > { %1876 = vst [vmem:[%s2357_s16 + $0x58] sm:$0xff] %v1340_v1  ;;  %v1342_v37 = vsub.f32 %v1334_v10, %v1318_v21  ;;  %1049 = vrot.lane.b32.xlu1 %v946_v61, %s1995_s20  ;;  %v1343_v28 = vsub.f32 %v1335_v36, %v1319_v0  ;;  %v1165_v60 = vmul.f32 %v2512_v59, %v2507_v57 }
 0x1bc   : > { %v1864_v15 = vadd.f32 -1.0, %v1280_v5  ;;  %v1336_v24 = vadd.f32 %v1328_v53, %v2393_v29  ;;  %v1356_v29 = vmul.f32 %v2413_v14, %v2210_v41  ;;  %1877 = vst [vmem:[%s2357_s16 + $0x60] sm:$0xff] %v1341_v45  ;;  %v1358_v41 = vmul.f32 %v1861_v18, %v2246_v9  ;;  %v2479_v14 = vpop.f32.mrb[16].mxu1 }
 0x1bd   : > { %1878 = vst [vmem:[%s2357_s16 + $0x68] sm:$0xff] %v1342_v37  ;;  %1879 = vst [vmem:[%s2357_s16 + $0x70] sm:$0xff] %v1343_v28  ;;  %v1368_v9 = vadd.f32 %v1360_v55, %v2262_v23  ;;  %v2523_v16 = vadd.f32 -1.0, %v1165_v60  ;;  %v989_v3 = vshrl.u32 %v981_v47, 7  ;;  %v2548_v6 = vand.u32 127, %v981_v47 }
 0x1be   : > { %vm1296_vm3 = vcmp.gt.f32.partialorder %v1864_v15, 0.0  ;;  %v1364_v49 = vadd.f32 %v1356_v29, %v2226_v54  ;;  %v1361_v51 = vmul.f32 %v1864_v15, %v2244_v8  ;;  %v1367_v54 = vadd.f32 %v1359_v50, %v2264_v26 }
 0x1bf   : > { %v1872_v38 = vsel %vm1296_vm3, 1.0, %v1990_v56  ;;  %v1366_v33 = vadd.f32 %v1358_v41, %v2264_v26  ;;  %vm1376_vm13 = vcmp.gt.f32.partialorder %v1368_v9, 0.0  ;;  %v2504_v26 = vld [vmem:[%s2499_s27] sm:$0xff]  ;;  %1187 = vst [vmem:[%s2134_s22 + $0x8] sm:$0xff] %v2523_v16  ;;  %v2550_v10 = vsub.s32 0, %v989_v3 }
 0x1c0   : > { %v1320_v27 = vmul.f32 %v1872_v38, %v2330_v48  ;;  %v2484_v48 = vpop.f32.mrb[17].mxu1  ;;  %vm1372_vm8 = vcmp.gt.f32.partialorder %v1364_v49, 0.0  ;;  %v1369_v58 = vadd.f32 %v1361_v51, %v2262_v23  ;;  %vm1375_vm10 = vcmp.gt.f32.partialorder %v1367_v54, 0.0 }
 0x1c1   : > { %v954_v25 = vpop.f32.mrb[18].mxu1  ;;  %vm1891_vm9 = vmpackc.low %vm1372_vm8, %vm1370_vm7  ;;  %vm1374_vm14 = vcmp.gt.f32.partialorder %v1366_v33, 0.0  ;;  %vm983_vm0 = vcmp.lt.s32.totalorder %v2548_v6, 17  ;;  %vm1028_vm1 = vcmp.lt.s32.totalorder %v2548_v6, 15  ;;  %vm1051_vm3 = vcmp.lt.s32.totalorder %v2548_v6, 1 }
 0x1c2   : > { %v1344_v30 = vsub.f32 %v1336_v24, %v1320_v27  ;;  %v956_v52 = vpop.f32.mrb[19].mxu1  ;;  %1071 = vrot.lane.b32.xlu0 %v954_v25, %s1996_s18  ;;  %1892 = vmatpush1.bf16.msk.msra.mxu0 %vm1891_vm9, %v1991_v22  ;;  %vm1377_vm11 = vcmp.gt.f32.partialorder %v1369_v58, 0.0  ;;  %vm1895_vm15 = vmpackc.low %vm1376_vm13, %vm1374_vm14  ;;  %vm1075_vm4 = vcmp.lt.s32.totalorder %v2548_v6, 127  ;;  %vm1097_vm5 = vcmp.lt.s32.totalorder %v2548_v6, 113 }
 0x1c3   : > { %1073 = vrot.lane.b32.xlu1 %v956_v52, %s1996_s18  ;;  %vm1893_vm12 = vmpackc.low %vm1377_vm11, %vm1375_vm10  ;;  %v960_v8 = vpop.f32.mrb[20].mxu1  ;;  %vm1120_vm6 = vcmp.lt.s32.totalorder %v2548_v6, 112  ;;  %vm1142_vm7 = vcmp.lt.s32.totalorder %v2548_v6, 111  ;;  %vm1169_vm9 = vcmp.gt.f32.partialorder %v2523_v16, 0.0 }
 0x1c4   : > { %1880 = vst [vmem:[%s2357_s16 + $0x78] sm:$0xff] %v1344_v30  ;;  %1894 = vmatprep.subr.msk.bf16.mxu0 %vm1893_vm12, %v1991_v22  ;;  %v962_v23 = vpop.f32.mrb[21].mxu1  ;;  %s1785_s16 = sld [smem:[#allocation2 + $0x5]] }
 0x1c5   : > { %v964_v34 = vpop.f32.mrb[22].mxu1 }
 0x1c6   : > { %1896 = vmatpush1.bf16.msk.msra.mxu0 %vm1895_vm15, %v1991_v22  ;;  %1093 = vrot.lane.b32.xlu0 %v960_v8, %s1997_s28  ;;  %v966_v17 = vpop.f32.mrb[23].mxu1  ;;  %v1164_v22 = vmul.f32 %v2512_v59, %v2504_v26  ;;  %v1786_v8 = vld [vmem:[%s2800_s9 + $0x1] ss:$4 sm:$0x3] }
 0x1c7   : > { %1095 = vrot.lane.b32.xlu1 %v962_v23, %s1997_s28 }
 0x1c8   : > { %v2521_v18 = vadd.f32 -1.0, %v1164_v22 }
 0x1c9   : > { %1897 = vmatmul.mubr.msk.bf16.vlgmr.msra.gmra.mrb[8].mxu0 %vm880_vm2, %v2288_v39  ;;  %v970_v39 = vpop.f32.mrb[24].mxu1 }
 0x1ca   : > { %1440 = vmatprep.mubr.bf16.mxu0 %v1989_v2  ;;  %1116 = vrot.lane.b32.xlu0 %v964_v34, %s1998_s29  ;;  %1186 = vst [vmem:[%s2134_s22] sm:$0xff] %v2521_v18  ;;  %v972_v63 = vpop.f32.mrb[25].mxu1  ;;  %vm1168_vm8 = vcmp.gt.f32.partialorder %v2521_v18, 0.0 }
 0x1cb   : > { %1118 = vrot.lane.b32.xlu1 %v966_v17, %s1998_s29  ;;  %v974_v19 = vpop.f32.mrb[26].mxu1 }
 0x1cc   : > { %v975_v1 = vpop.f32.mrb[27].mxu1 }
 0x1ce   : > { %1138 = vrot.lane.b32.xlu0 %v970_v39, %s2805_s14 }
 0x1cf   : > { %1140 = vrot.lane.b32.xlu1 %v972_v63, %s2805_s14  ;;  %s2690_s14 = scalar_lea.vmem %s2804_s13, %s2118_s26  ;;  %s2809_s26 = smov 111  }
 0x1d1   : > { %1898 = vmatmul.mubr.msk.bf16.gmra.mrb[12].mxu0 %vm880_vm2, %v2296_v40  ;;  %v574_v40 = vld [vmem:[%s2800_s9] ss:$4 sm:$0x3] }
 0x1d2   : > { %1450 = vmatprep.mubr.bf16.mxu0 %v1989_v2  ;;  %v2572_v53 = vrot.slane %v574_v40, %v2550_v10 }
 0x1d9   : > { %1899 = vmatmul.mubr.msk.bf16.gmra.mrb[16].mxu0 %vm880_vm2, %v2304_v42  ;;  %v1787_v42 = vld [vmem:[%s2800_s9 + $0x2] ss:$4 sm:$0x3] }
 0x1da   : > { %1460 = vmatprep.mubr.bf16.mxu0 %v1989_v2  ;;  %v986_v7 = vmul.f32 %v1787_v42, %v574_v40  ;;  %v2601_v51 = vrot.slane %v1787_v42, %v2550_v10  ;;  %v1100_v63 = vmul.f32 %v1787_v42, %v1786_v8 }
 0x1dc   : > { %v2561_v11 = vrot.slane %v986_v7, %v2550_v10 }
 0x1e1   : > { %1900 = vmatmul.mubr.msk.bf16.gmra.mrb[20].mxu0 %vm880_vm2, %v2312_v43  ;;  %v2552_v43 = vsub.s32 1, %v989_v3 }
 0x1e2   : > { %1470 = vmatprep.mubr.bf16.mxu0 %v1989_v2 }
 0x1e3   : > { %v2564_v5 = vrot.slane %v986_v7, %v2552_v43  ;;  %v2575_v20 = vrot.slane %v574_v40, %v2552_v43  ;;  %v2604_v41 = vrot.slane %v1787_v42, %v2552_v43  ;;  %v2637_v42 = vrot.slane %v1100_v63, %v2552_v43 }
 0x1e9   : > { %1901 = vmatmul.mubr.msk.bf16.gmra.mrb[24].mxu0 %vm880_vm2, %v2320_v44  ;;  %v2558_v44 = vld [vmem:[%s2800_s9 + $0x3] ss:$4 sm:$0x3]  ;;  %vm1006_vm2 = vcmp.lt.s32.totalorder %v2548_v6, 16 }
 0x1ea   : > { %v1031_v46 = vmul.f32 %v2558_v44, %v574_v40  ;;  %v2618_v17 = vrot.slane %v2558_v44, %v2550_v10  ;;  %v2622_v22 = vrot.slane %v2558_v44, %v2552_v43 }
 0x1ec   : > { %v2588_v0 = vrot.slane %v1031_v46, %v2550_v10  ;;  %v2591_v35 = vrot.slane %v1031_v46, %v2552_v43 }
 0x205   : > { %v978_v2 = vpop.permute.xlu0 %977 }
 0x206   : > { %v980_v12 = vpop.permute.xlu1 %979 }
 0x207   : > { %v984_v13 = vsel %vm983_vm0, %v978_v2, %v980_v12  ;;  %v985_v36 = vsel %vm983_vm0, %v980_v12, %v978_v2  ;;  %v2634_v2 = vrot.slane %v1100_v63, %v2550_v10 }
 0x208   : > { %v998_v15 = vmul.f32 %v2561_v11, %v985_v36  ;;  %v999_v61 = vmul.f32 %v2564_v5, %v984_v13 }
 0x209   : > { %v1003_v62 = vpop.permute.xlu0 %1002 }
 0x20a   : > { %v1005_v21 = vpop.permute.xlu1 %1004 }
 0x20b   : > { %v1007_v31 = vsel %vm1006_vm2, %v1003_v62, %v1005_v21  ;;  %v1008_v24 = vsel %vm1006_vm2, %v1005_v21, %v1003_v62  ;;  %v1145_v62 = vmul.f32 %v2558_v44, %v1786_v8  ;;  %v2648_v21 = vrot.slane %v1786_v8, %v2550_v10 }
 0x20c   : > { %v1020_v32 = vmul.f32 %v2572_v53, %v1008_v24  ;;  %v1021_v45 = vmul.f32 %v2575_v20, %v1007_v31  ;;  %v2651_v31 = vrot.slane %v1786_v8, %v2552_v43 }
 0x20e   : > { %v1022_v38 = vadd.f32 %v1020_v32, %v998_v15  ;;  %v1023_v29 = vadd.f32 %v1021_v45, %v999_v61 }
 0x217   : > { %v1025_v37 = vpop.permute.xlu0 %1024 }
 0x21f   : > { %v1027_v28 = vpop.permute.xlu1 %1026 }
 0x220   : > { %v1029_v27 = vsel %vm1028_vm1, %v1025_v37, %v1027_v28  ;;  %v1030_v4 = vsel %vm1028_vm1, %v1027_v28, %v1025_v37  ;;  %v2662_v28 = vrot.slane %v1145_v62, %v2552_v43  ;;  %v1840_v43 = vsel %vm1168_vm8, 1.0, %v1990_v56 }
 0x221   : > { %v1043_v49 = vmul.f32 %v2588_v0, %v1030_v4  ;;  %v1044_v50 = vmul.f32 %v2591_v35, %v1029_v27 }
 0x223   : > { %v1045_v55 = vadd.f32 %v1043_v49, %v1022_v38  ;;  %v1046_v54 = vadd.f32 %v1044_v50, %v1023_v29  ;;  %v2659_v29 = vrot.slane %v1145_v62, %v2550_v10  ;;  %v2668_v50 = vstv %s1785_s16 }
 0x224   : > { %v1178_v16 = vmul.f32 %v2668_v50, %v2504_v26 }
 0x22c   : > { %v1048_v30 = vpop.permute.xlu0 %1047 }
 0x22d   : > { %v1050_v58 = vpop.permute.xlu1 %1049 }
 0x22e   : > { %v1052_v33 = vsel %vm1051_vm3, %v1048_v30, %v1050_v58  ;;  %v1053_v25 = vsel %vm1051_vm3, %v1050_v58, %v1048_v30  ;;  %v1841_v58 = vsel %vm1169_vm9, 1.0, %v1990_v56 }
 0x22f   : > { %v1065_v9 = vmul.f32 %v2601_v51, %v1053_v25  ;;  %v1066_v52 = vmul.f32 %v2604_v41, %v1052_v33  ;;  %v1179_v25 = vmul.f32 %v2668_v50, %v2507_v57 }
 0x231   : > { %v1067_v23 = vadd.f32 %v1065_v9, %v1045_v55  ;;  %v1068_v34 = vadd.f32 %v1066_v52, %v1046_v54  ;;  %v2670_v54 = vstv %s1783_s19 }
 0x232   : > { %v1175_v8 = vmul.f32 %v1840_v43, %v2670_v54 }
 0x233   : > { %v1069_v47 = vadd.f32 %v1067_v23, %v2479_v14  ;;  %v1070_v3 = vadd.f32 %v1068_v34, %v2484_v48  ;;  %v1176_v23 = vmul.f32 %v1841_v58, %v2670_v54 }
 0x234   : > { %v1072_v60 = vpop.permute.xlu0 %1071 }
 0x235   : > { %v1074_v39 = vpop.permute.xlu1 %1073 }
 0x236   : > { %v1076_v19 = vsel %vm1075_vm4, %v1072_v60, %v1074_v39  ;;  %v1077_v1 = vsel %vm1075_vm4, %v1074_v39, %v1072_v60 }
 0x237   : > { %v1089_v40 = vmul.f32 %v2618_v17, %v1076_v19  ;;  %v1090_v7 = vmul.f32 %v2622_v22, %v1077_v1 }
 0x238   : > { %v1094_v12 = vpop.permute.xlu0 %1093 }
 0x239   : > { %v1091_v13 = vadd.f32 %v1089_v40, %v1069_v47  ;;  %v1092_v36 = vadd.f32 %v1090_v7, %v1070_v3  ;;  %v1096_v46 = vpop.permute.xlu1 %1095 }
 0x23a   : > { %v1098_v14 = vsel %vm1097_vm5, %v1094_v12, %v1096_v46  ;;  %v1099_v48 = vsel %vm1097_vm5, %v1096_v46, %v1094_v12 }
 0x23b   : > { %v1112_v15 = vmul.f32 %v2634_v2, %v1098_v14  ;;  %v1113_v61 = vmul.f32 %v2637_v42, %v1099_v48 }
 0x23c   : > { %v1117_v24 = vpop.permute.xlu0 %1116 }
 0x23d   : > { %v1114_v32 = vadd.f32 %v1112_v15, %v1091_v13  ;;  %v1115_v45 = vadd.f32 %v1113_v61, %v1092_v36  ;;  %v1119_v37 = vpop.permute.xlu1 %1118 }
 0x23e   : > { %v1121_v38 = vsel %vm1120_vm6, %v1117_v24, %v1119_v37  ;;  %v1122_v44 = vsel %vm1120_vm6, %v1119_v37, %v1117_v24 }
 0x23f   : > { %v1134_v27 = vmul.f32 %v2648_v21, %v1121_v38  ;;  %v1135_v4 = vmul.f32 %v2651_v31, %v1122_v44 }
 0x240   : > { %v1139_v49 = vpop.permute.xlu0 %1138 }
 0x241   : > { %v1136_v30 = vadd.f32 %v1134_v27, %v1114_v32  ;;  %v1137_v55 = vadd.f32 %v1135_v4, %v1115_v45  ;;  %v1141_v10 = vpop.permute.xlu1 %1140 }
 0x242   : > { %v1143_v33 = vsel %vm1142_vm7, %v1139_v49, %v1141_v10  ;;  %v1144_v18 = vsel %vm1142_vm7, %v1141_v10, %v1139_v49 }
 0x243   : > { %v1157_v9 = vmul.f32 %v2659_v29, %v1143_v33  ;;  %v1158_v52 = vmul.f32 %v2662_v28, %v1144_v18 }
 0x245   : > { %v1159_v34 = vadd.f32 %v1157_v9, %v1136_v30  ;;  %v1160_v60 = vadd.f32 %v1158_v52, %v1137_v55 }
 0x247   : > { %v1180_v39 = vadd.f32 %v1178_v16, %v1159_v34  ;;  %v1181_v63 = vadd.f32 %v1179_v25, %v1160_v60 }
 0x249   : > { %v1182_v26 = vsub.f32 %v1180_v39, %v1175_v8  ;;  %v1183_v57 = vsub.f32 %v1181_v63, %v1176_v23 }
 0x24b   : > { %1184 = vst [vmem:[%s2690_s14] sm:$0xff] %v1182_v26  ;;  %1185 = vst [vmem:[%s2690_s14 + $0x8] sm:$0xff] %v1183_v57 }
 0x252   : > { %v2695_v19 = vld [vmem:[%s2499_s27 + $0x10] sm:$0xff]  ;;  %v2698_v1 = vld [vmem:[%s2499_s27 + $0x18] sm:$0xff] }
 0x253   : > { %v1564_v47 = vmul.f32 %v2695_v19, %v2512_v59  ;;  %v1565_v3 = vmul.f32 %v2698_v1, %v2512_v59 }
 0x255   : > { %v2704_v40 = vadd.f32 -1.0, %v1564_v47  ;;  %v2706_v7 = vadd.f32 -1.0, %v1565_v3 }
 0x257   : > { %1910 = vst [vmem:[%s2134_s22 + $0x20] sm:$0xff] %v2704_v40  ;;  %1911 = vst [vmem:[%s2134_s22 + $0x28] sm:$0xff] %v2706_v7  ;;  %vm1568_vm10 = vcmp.gt.f32.partialorder %v2704_v40, 0.0  ;;  %vm1569_vm11 = vcmp.gt.f32.partialorder %v2706_v7, 0.0  ;;  %v1576_v7 = vmul.f32 %v2695_v19, %v2668_v50 }
 0x258   : > { %v1907_v40 = vsel %vm1569_vm11, 1.0, %v1990_v56 }
 0x29c   : > { %v1432_v12 = vpop.f32.mrb[8].mxu0 }
 0x29d   : > { %v1434_v13 = vpop.f32.mrb[9].mxu0  ;;  %1479 = vrot.lane.b32.xlu0 %v1432_v12, %s1992_s21 }
 0x29e   : > { %1481 = vrot.lane.b32.xlu1 %v1434_v13, %s1992_s21  ;;  %v1436_v36 = vpop.f32.mrb[10].mxu0 }
 0x29f   : > { %v1438_v46 = vpop.f32.mrb[11].mxu0 }
 0x2a1   : > { %1489 = vrot.lane.b32.xlu0 %v1436_v36, %s1993_s17 }
 0x2a2   : > { %1491 = vrot.lane.b32.xlu1 %v1438_v46, %s1993_s17 }
 0x2a4   : > { %v1442_v59 = vpop.f32.mrb[12].mxu0 }
 0x2a5   : > { %v1444_v14 = vpop.f32.mrb[13].mxu0  ;;  %1499 = vrot.lane.b32.xlu0 %v1442_v59, %s1994_s30 }
 0x2a6   : > { %1501 = vrot.lane.b32.xlu1 %v1444_v14, %s1994_s30  ;;  %v1446_v48 = vpop.f32.mrb[14].mxu0 }
 0x2a7   : > { %v1448_v62 = vpop.f32.mrb[15].mxu0 }
 0x2a9   : > { %1509 = vrot.lane.b32.xlu0 %v1446_v48, %s1995_s20 }
 0x2aa   : > { %1511 = vrot.lane.b32.xlu1 %v1448_v62, %s1995_s20 }
 0x2ac   : > { %v1452_v15 = vpop.f32.mrb[16].mxu0 }
 0x2ad   : > { %v1454_v61 = vpop.f32.mrb[17].mxu0 }
 0x2ae   : > { %v1456_v24 = vpop.f32.mrb[18].mxu0 }
 0x2af   : > { %v1458_v32 = vpop.f32.mrb[19].mxu0  ;;  %1521 = vrot.lane.b32.xlu0 %v1456_v24, %s1996_s18 }
 0x2b0   : > { %1523 = vrot.lane.b32.xlu1 %v1458_v32, %s1996_s18 }
 0x2b4   : > { %v1462_v45 = vpop.f32.mrb[20].mxu0 }
 0x2b5   : > { %v1464_v37 = vpop.f32.mrb[21].mxu0  ;;  %1531 = vrot.lane.b32.xlu0 %v1462_v45, %s1997_s28 }
 0x2b6   : > { %1533 = vrot.lane.b32.xlu1 %v1464_v37, %s1997_s28  ;;  %v1466_v38 = vpop.f32.mrb[22].mxu0 }
 0x2b7   : > { %v1468_v44 = vpop.f32.mrb[23].mxu0 }
 0x2b9   : > { %1541 = vrot.lane.b32.xlu0 %v1466_v38, %s1998_s29 }
 0x2ba   : > { %1543 = vrot.lane.b32.xlu1 %v1468_v44, %s1998_s29 }
 0x2bc   : > { %v1472_v27 = vpop.f32.mrb[24].mxu0 }
 0x2bd   : > { %v1474_v4 = vpop.f32.mrb[25].mxu0  ;;  %1551 = vrot.lane.b32.xlu0 %v1472_v27, %s2809_s26 }
 0x2be   : > { %1553 = vrot.lane.b32.xlu1 %v1474_v4, %s2809_s26  ;;  %v1476_v49 = vpop.f32.mrb[26].mxu0 }
 0x2bf   : > { %v1477_v30 = vpop.f32.mrb[27].mxu0 }
 0x30f   : > { %v1480_v55 = vpop.permute.xlu0 %1479 }
 0x310   : > { %v1482_v10 = vpop.permute.xlu1 %1481 }
 0x311   : > { %v1483_v8 = vsel %vm983_vm0, %v1480_v55, %v1482_v10  ;;  %v1484_v23 = vsel %vm983_vm0, %v1482_v10, %v1480_v55 }
 0x312   : > { %v1485_v47 = vmul.f32 %v1484_v23, %v2561_v11  ;;  %v1486_v3 = vmul.f32 %v1483_v8, %v2564_v5 }
 0x313   : > { %v1490_v43 = vpop.permute.xlu0 %1489 }
 0x314   : > { %v1492_v58 = vpop.permute.xlu1 %1491 }
 0x315   : > { %v1493_v16 = vsel %vm1006_vm2, %v1490_v43, %v1492_v58  ;;  %v1494_v25 = vsel %vm1006_vm2, %v1492_v58, %v1490_v43 }
 0x316   : > { %v1495_v39 = vmul.f32 %v1494_v25, %v2572_v53  ;;  %v1496_v63 = vmul.f32 %v1493_v16, %v2575_v20 }
 0x317   : > { %v1500_v33 = vpop.permute.xlu0 %1499 }
 0x318   : > { %v1502_v18 = vpop.permute.xlu1 %1501  ;;  %v1497_v46 = vadd.f32 %v1495_v39, %v1485_v47  ;;  %v1498_v59 = vadd.f32 %v1496_v63, %v1486_v3 }
 0x319   : > { %v1503_v34 = vsel %vm1028_vm1, %v1500_v33, %v1502_v18  ;;  %v1504_v60 = vsel %vm1028_vm1, %v1502_v18, %v1500_v33 }
 0x31a   : > { %v1505_v12 = vmul.f32 %v1504_v60, %v2588_v0  ;;  %v1506_v13 = vmul.f32 %v1503_v34, %v2591_v35  ;;  %v1575_v34 = vmul.f32 %v1907_v40, %v2670_v54 }
 0x31b   : > { %v1510_v9 = vpop.permute.xlu0 %1509 }
 0x31c   : > { %v1512_v52 = vpop.permute.xlu1 %1511  ;;  %v1507_v48 = vadd.f32 %v1505_v12, %v1497_v46  ;;  %v1508_v62 = vadd.f32 %v1506_v13, %v1498_v59 }
 0x31d   : > { %v1513_v26 = vsel %vm1051_vm3, %v1510_v9, %v1512_v52  ;;  %v1514_v57 = vsel %vm1051_vm3, %v1512_v52, %v1510_v9  ;;  %v1906_v9 = vsel %vm1568_vm10, 1.0, %v1990_v56  ;;  %v1577_v52 = vmul.f32 %v2698_v1, %v2668_v50 }
 0x31e   : > { %v1515_v53 = vmul.f32 %v1514_v57, %v2601_v51  ;;  %v1516_v20 = vmul.f32 %v1513_v26, %v2604_v41  ;;  %v1574_v23 = vmul.f32 %v1906_v9, %v2670_v54 }
 0x320   : > { %v1517_v0 = vadd.f32 %v1515_v53, %v1507_v48  ;;  %v1518_v32 = vadd.f32 %v1516_v20, %v1508_v62 }
 0x321   : > { %v1522_v36 = vpop.permute.xlu0 %1521 }
 0x322   : > { %v1524_v14 = vpop.permute.xlu1 %1523  ;;  %v1519_v44 = vadd.f32 %v1517_v0, %v1452_v15  ;;  %v1520_v27 = vadd.f32 %v1518_v32, %v1454_v61 }
 0x323   : > { %v1525_v24 = vsel %vm1075_vm4, %v1522_v36, %v1524_v14  ;;  %v1526_v11 = vsel %vm1075_vm4, %v1524_v14, %v1522_v36 }
 0x324   : > { %v1527_v41 = vmul.f32 %v1525_v24, %v2618_v17  ;;  %v1528_v37 = vmul.f32 %v1526_v11, %v2622_v22 }
 0x326   : > { %v1529_v43 = vadd.f32 %v1527_v41, %v1519_v44  ;;  %v1530_v58 = vadd.f32 %v1528_v37, %v1520_v27 }
 0x327   : > { %v1532_v5 = vpop.permute.xlu0 %1531 }
 0x328   : > { %v1534_v35 = vpop.permute.xlu1 %1533 }
 0x329   : > { %v1535_v45 = vsel %vm1097_vm5, %v1532_v5, %v1534_v35  ;;  %v1536_v51 = vsel %vm1097_vm5, %v1534_v35, %v1532_v5 }
 0x32a   : > { %v1537_v4 = vmul.f32 %v1535_v45, %v2634_v2  ;;  %v1538_v49 = vmul.f32 %v1536_v51, %v2637_v42 }
 0x32b   : > { %v1542_v38 = vpop.permute.xlu0 %1541 }
 0x32c   : > { %v1544_v30 = vpop.permute.xlu1 %1543  ;;  %v1539_v15 = vadd.f32 %v1537_v4, %v1529_v43  ;;  %v1540_v61 = vadd.f32 %v1538_v49, %v1530_v58 }
 0x32d   : > { %v1545_v55 = vsel %vm1120_vm6, %v1542_v38, %v1544_v30  ;;  %v1546_v10 = vsel %vm1120_vm6, %v1544_v30, %v1542_v38 }
 0x32e   : > { %v1547_v17 = vmul.f32 %v1545_v55, %v2648_v21  ;;  %v1548_v22 = vmul.f32 %v1546_v10, %v2651_v31 }
 0x32f   : > { %v1552_v33 = vpop.permute.xlu0 %1551 }
 0x330   : > { %v1554_v2 = vpop.permute.xlu1 %1553  ;;  %v1549_v16 = vadd.f32 %v1547_v17, %v1539_v15  ;;  %v1550_v25 = vadd.f32 %v1548_v22, %v1540_v61 }
 0x331   : > { %v1555_v42 = vsel %vm1142_vm7, %v1552_v33, %v1554_v2  ;;  %v1556_v18 = vsel %vm1142_vm7, %v1554_v2, %v1552_v33 }
 0x332   : > { %v1557_v21 = vmul.f32 %v1555_v42, %v2659_v29  ;;  %v1558_v31 = vmul.f32 %v1556_v18, %v2662_v28 }
 0x334   : > { %v1559_v6 = vadd.f32 %v1557_v21, %v1549_v16  ;;  %v1560_v8 = vadd.f32 %v1558_v31, %v1550_v25 }
 0x336   : > { %v1578_v60 = vadd.f32 %v1576_v7, %v1559_v6  ;;  %v1579_v29 = vadd.f32 %v1577_v52, %v1560_v8 }
 0x338   : > { %v1580_v39 = vsub.f32 %v1578_v60, %v1574_v23  ;;  %v1581_v28 = vsub.f32 %v1579_v29, %v1575_v34 }
 0x33a   : > { %1908 = vst [vmem:[%s2690_s14 + $0x10] sm:$0xff] %v1580_v39  ;;  %1909 = vst [vmem:[%s2690_s14 + $0x18] sm:$0xff] %v1581_v28 }
 0x33b PF: > { %s25_s25 = sadd.s32 1, %s1986_s25  }
 0x33c   : > { %p22_p1 = scmp.ge.s32.totalorder %s25_s25, 4  }
 0x33e   :  { %24 = sbr.rel (!%p22_p1) target bundleno = 1 (0x1), region = 138 }
 0x345   :  { %1652 = vsyncpa [#allocation3], 1 }
 0x346   :  { %1654 = vsyncpa [#allocation3 + $0x1], 1 }

</bundles_post_ra>
